<compile_context>
chip_gen: v7x
topology: tpu7x:2x2x1
jax: 0.10.0
libtpu: 0.0.40
codegen_flags: <defaults>
</compile_context>

<pallas_src>
import functools
import math

import jax
import jax.numpy as jnp
from jax.experimental import pallas as pl
from jax.experimental.pallas import tpu as pltpu

D_MODEL = 32
N_HEADS = 4
D_HEAD = D_MODEL // N_HEADS
D_FF = 64
VOCAB = 48
VOCAB_PAD = 128          # lane-dense output projection (unmasked vst); sliced back to VOCAB outside
EPS = 1e-5
NEG_INF = -1e9


def _offsets(entries):
    off, table = 0, {}
    for name, width in entries:
        table[name] = (off, off + width)
        off += width
    return table, off


# Weight slab: every [D_MODEL, X] matrix lane-concatenated into ONE bf16 [32, 448] operand.
# Ordered so no static slice crosses a 128-lane tile boundary.
W_ENTRIES = [
    ("wout", VOCAB_PAD),      # [  0:128)
    ("wqkv_s", 3 * D_MODEL),  # [128:224)
    ("wo_s", D_MODEL),        # [224:256)
    ("wq_c", D_MODEL),        # [256:288)
    ("wkv_c", 2 * D_MODEL),   # [288:352)
    ("wo_c", D_MODEL),        # [352:384)
    ("w1", D_FF),             # [384:448)
]
# Bias / LayerNorm slab: every vector packed into ONE f32 [1, 672] row (no 128-boundary crossing).
B_ENTRIES = [
    ("bout", VOCAB_PAD), ("bqkv_s", 3 * D_MODEL), ("bo_s", D_MODEL),
    ("bkv_c", 2 * D_MODEL), ("b1f", D_FF),
    ("g1", D_MODEL), ("b1", D_MODEL), ("bq_c", D_MODEL), ("bo_c", D_MODEL),
    ("g2", D_MODEL), ("b2", D_MODEL), ("b2f", D_MODEL), ("g3", D_MODEL), ("b3", D_MODEL),
]
W_OFF, W_TOTAL = _offsets(W_ENTRIES)
B_OFF, B_TOTAL = _offsets(B_ENTRIES)


def _floordiv_const(x, d):
    """x // d for non-negative int32 x and static positive d (shift when power of two)."""
    d = int(d)
    if d & (d - 1) == 0:
        return jnp.right_shift(x, d.bit_length() - 1)
    return x // d  # TODO(synk): non power-of-two Td/Te relies on Mosaic s32 vector divide.


# ----------------------- fused single-call decoder kernel -----------------------

def _fused_decoder_kernel(dec_ref, enc_ref, kmask_ref, w_ref, w2_ref, b_ref, out_ref,
                          *, B, Td, Te, H, dh, eps):
    D = H * dh
    Mq = B * Td
    Mk = B * Te

    def wslab(name):                               # bf16 [D, width] weight view
        s, e = W_OFF[name]
        return w_ref[:, s:e]

    def brow(name):                                # f32 [1, width] bias/LN row
        s, e = B_OFF[name]
        return b_ref[:, s:e]

    def mm(a, w_bf16):                             # bf16 MXU operands, f32 accumulation
        return jnp.dot(a.astype(jnp.bfloat16), w_bf16,
                       preferred_element_type=jnp.float32)

    def layernorm(x, g, b):
        mu = jnp.mean(x, axis=-1, keepdims=True)
        var = jnp.mean((x - mu) ** 2, axis=-1, keepdims=True)
        return (x - mu) * jax.lax.rsqrt(var + eps) * g + b

    def softmax(s):
        s = s - jnp.max(s, axis=-1, keepdims=True)
        p = jnp.exp(s)
        return p * pl.reciprocal(jnp.sum(p, axis=-1, keepdims=True), approx=True)

    def mha(q_arr, q0, k_arr, k0, v_arr, v0, bias, wo_name, bo_name):
        # Head concat folded into the output projection:
        #   acc += (P_h @ V_h) @ Wo[h*dh:(h+1)*dh, :]
        # (no jnp.concatenate / narrow lane merges; Wo row slices are 8-sublane aligned in f32).
        wo = wslab(wo_name).astype(jnp.float32)    # [D, D], one vreg, cast once
        acc = jnp.zeros((Mq, D), jnp.float32)
        for h in range(H):
            a, b = h * dh, (h + 1) * dh
            s = jax.lax.dot_general(               # Q K^T, contract last dims (no transpose op)
                q_arr[:, q0 + a:q0 + b], k_arr[:, k0 + a:k0 + b],
                dimension_numbers=(((1,), (1,)), ((), ())),
                preferred_element_type=jnp.float32) + bias
            p = softmax(s)
            pv = jnp.dot(p.astype(jnp.bfloat16), v_arr[:, v0 + a:v0 + b],
                         preferred_element_type=jnp.float32)
            acc = acc + jnp.dot(pv, wo[a:b, :], preferred_element_type=jnp.float32)
        return acc + brow(bo_name)

    x_in = dec_ref[...].astype(jnp.float32)        # [Mq, D]
    enc = enc_ref[...].astype(jnp.float32)         # [Mk, D]

    # --- attention masks built in-kernel (block-diagonal over batch, O(T) HBM inputs only) ---
    row_s = jax.lax.broadcasted_iota(jnp.int32, (Mq, Mq), 0)
    col_s = jax.lax.broadcasted_iota(jnp.int32, (Mq, Mq), 1)
    same_b_s = _floordiv_const(row_s, Td) == _floordiv_const(col_s, Td)
    self_bias = jnp.where(same_b_s & (row_s >= col_s), 0.0, NEG_INF)

    row_c = jax.lax.broadcasted_iota(jnp.int32, (Mq, Mk), 0)
    col_c = jax.lax.broadcasted_iota(jnp.int32, (Mq, Mk), 1)
    same_b_c = _floordiv_const(row_c, Td) == _floordiv_const(col_c, Te)
    kvalid = kmask_ref[...] > 0.5                  # [1, Mk]
    cross_bias = jnp.where(same_b_c & kvalid, 0.0, NEG_INF)

    # --- masked (causal) self-attention; fused QKV projection, 1/sqrt(dh) baked into Wq ---
    qkv = (mm(x_in, wslab("wqkv_s")) + brow("bqkv_s")).astype(jnp.bfloat16)   # [Mq, 3D]
    sa = mha(qkv, 0, qkv, D, qkv, 2 * D, self_bias, "wo_s", "bo_s")
    x = layernorm(x_in + sa, brow("g1"), brow("b1"))

    # --- cross-attention with encoder key-padding mask; fused KV projection ---
    qc = (mm(x, wslab("wq_c")) + brow("bq_c")).astype(jnp.bfloat16)           # [Mq, D]
    kv = (mm(enc, wslab("wkv_c")) + brow("bkv_c")).astype(jnp.bfloat16)       # [Mk, 2D]
    ca = mha(qc, 0, kv, 0, kv, D, cross_bias, "wo_c", "bo_c")
    x = layernorm(x + ca, brow("g2"), brow("b2"))

    # --- position-wise feed-forward ---
    h1 = jnp.maximum(mm(x, wslab("w1")) + brow("b1f"), 0.0)
    h2 = mm(h1, w2_ref[...]) + brow("b2f")
    x = layernorm(x + h2, brow("g3"), brow("b3"))

    # --- predictor output projection (padded to 128 lanes -> unmasked stores) ---
    out_ref[...] = (mm(x, wslab("wout")) + brow("bout")).astype(out_ref.dtype)


# ----------------------------- JAX wrapper ------------------------------------

def decoder_forward(params, decoder_input, enc_output, key_mask):
    B, Td, D = decoder_input.shape
    Te = enc_output.shape[1]
    assert D == D_MODEL
    scale = 1.0 / math.sqrt(D_HEAD)

    # Bake the attention scale into the query projections (removes per-head score scaling).
    wq_s, bq_s = params["wq_s"] * scale, params["bq_s"] * scale
    wq_c, bq_c = params["wq_c"] * scale, params["bq_c"] * scale

    wmats = {
        "wout": jnp.pad(params["w_out"], ((0, 0), (0, VOCAB_PAD - VOCAB))),
        "wqkv_s": jnp.concatenate([wq_s, params["wk_s"], params["wv_s"]], axis=1),
        "wo_s": params["wo_s"],
        "wq_c": wq_c,
        "wkv_c": jnp.concatenate([params["wk_c"], params["wv_c"]], axis=1),
        "wo_c": params["wo_c"],
        "w1": params["w1"],
    }
    bvecs = {
        "bout": jnp.pad(params["b_out"], (0, VOCAB_PAD - VOCAB)),
        "bqkv_s": jnp.concatenate([bq_s, params["bk_s"], params["bv_s"]]),
        "bo_s": params["bo_s"],
        "bkv_c": jnp.concatenate([params["bk_c"], params["bv_c"]]),
        "b1f": params["b1f"],
        "g1": params["g1"], "b1": params["b1"],
        "bq_c": bq_c, "bo_c": params["bo_c"],
        "g2": params["g2"], "b2": params["b2"],
        "b2f": params["b2f"], "g3": params["g3"], "b3": params["b3"],
    }
    for name, width in W_ENTRIES:
        assert wmats[name].shape == (D_MODEL, width), name
    for name, width in B_ENTRIES:
        assert bvecs[name].shape == (width,), name

    # Two pre-packed parameter slabs -> 3 parameter DMAs instead of ~22 tiny ones.
    w_slab = jnp.concatenate([wmats[n] for n, _ in W_ENTRIES], axis=1).astype(jnp.bfloat16)
    b_slab = jnp.concatenate([bvecs[n] for n, _ in B_ENTRIES]).reshape(1, B_TOTAL)
    b_slab = b_slab.astype(jnp.float32)

    operands = (
        decoder_input.reshape(B * Td, D),          # f32 [Mq, D]
        enc_output.reshape(B * Te, D),             # f32 [Mk, D]
        key_mask.astype(jnp.float32).reshape(1, B * Te),
        w_slab,                                    # bf16 [32, 448]
        params["w2"].astype(jnp.bfloat16),         # bf16 [64, 32]  (FFN down-proj, own operand)
        b_slab,                                    # f32  [1, 672]
    )

    vmem = pl.BlockSpec(memory_space=pltpu.MemorySpace.VMEM)
    out = pl.pallas_call(
        functools.partial(_fused_decoder_kernel, B=B, Td=Td, Te=Te,
                          H=N_HEADS, dh=D_HEAD, eps=EPS),
        out_shape=jax.ShapeDtypeStruct((B * Td, VOCAB_PAD), jnp.float32),
        in_specs=[vmem] * len(operands),
        out_specs=vmem,
    )(*operands)

    return out[:, :VOCAB].reshape(B, Td, VOCAB)    # [B, T_dec, VOCAB]


def init_params(key):
    ks = iter(jax.random.split(key, 24))

    def w(shape, scale=0.1):
        return scale * jax.random.normal(next(ks), shape, jnp.float32)

    D, F, V = D_MODEL, D_FF, VOCAB
    p = {}
    for tag in ("s", "c"):
        for name in ("q", "k", "v", "o"):
            p[f"w{name}_{tag}"] = w((D, D))
            p[f"b{name}_{tag}"] = jnp.zeros((D,), jnp.float32)
    p["w1"], p["b1f"] = w((D, F)), jnp.zeros((F,), jnp.float32)
    p["w2"], p["b2f"] = w((F, D)), jnp.zeros((D,), jnp.float32)
    p["w_out"], p["b_out"] = w((D, V)), jnp.zeros((V,), jnp.float32)
    for i in (1, 2, 3):
        p[f"g{i}"] = jnp.ones((D,), jnp.float32)
        p[f"b{i}"] = jnp.zeros((D,), jnp.float32)
    return p


if __name__ == "__main__":
    key = jax.random.PRNGKey(0)
    k1, k2, k3 = jax.random.split(key, 3)

    B, T_DEC, T_ENC = 2, 8, 16
    enc_output = jax.random.normal(k1, (B, T_ENC, D_MODEL), jnp.float32)
    decoder_input = jax.random.normal(k2, (B, T_DEC, D_MODEL), jnp.float32)
    # key_mask: 1.0 = valid, 0.0 = padding (second sequence has 4 padded positions)
    lengths = jnp.array([[T_ENC], [T_ENC - 4]])
    key_mask = (jnp.arange(T_ENC)[None, :] < lengths).astype(jnp.float32)

    params = init_params(k3)

    fwd = jax.jit(functools.partial(decoder_forward, params))
    out = fwd(decoder_input, enc_output, key_mask)
    jax.block_until_ready(out)
    assert out.shape == (B, T_DEC, VOCAB)
    assert bool(jnp.all(jnp.isfinite(out)))
    print("KERNEL_OK")
</pallas_src>

<mosaic_0001>
module attributes {stable_mosaic.version = 11 : i64} {
  func.func @_fused_decoder_kernel(%arg0: memref<16x32xf32, #tpu.memory_space<vmem>>, %arg1: memref<32x32xf32, #tpu.memory_space<vmem>>, %arg2: memref<1x32xf32, #tpu.memory_space<vmem>>, %arg3: memref<32x448xbf16, #tpu.memory_space<vmem>>, %arg4: memref<64x32xbf16, #tpu.memory_space<vmem>>, %arg5: memref<1x672xf32, #tpu.memory_space<vmem>>, %arg6: memref<16x128xf32, #tpu.memory_space<vmem>>) attributes {dimension_semantics = [], scalar_prefetch = 0 : i64, scratch_operands = 0 : i64, tpu.core_type = #tpu.core_type<tc>} {
    %c0 = arith.constant 0 : index
    %c0_0 = arith.constant 0 : index
    %0 = vector.load %arg0[%c0, %c0_0] : memref<16x32xf32, #tpu.memory_space<vmem>>, vector<16x32xf32>
    %c0_1 = arith.constant 0 : index
    %c0_2 = arith.constant 0 : index
    %1 = vector.load %arg1[%c0_1, %c0_2] : memref<32x32xf32, #tpu.memory_space<vmem>>, vector<32x32xf32>
    %2 = tpu.iota {dimensions = array<i32: 0>} : vector<16x16xi32>
    %3 = tpu.iota {dimensions = array<i32: 1>} : vector<16x16xi32>
    %c3_i32 = arith.constant 3 : i32
    %4 = vector.broadcast %c3_i32 : i32 to vector<16x16xi32>
    %5 = arith.shrsi %2, %4 : vector<16x16xi32>
    %c3_i32_3 = arith.constant 3 : i32
    %6 = vector.broadcast %c3_i32_3 : i32 to vector<16x16xi32>
    %7 = arith.shrsi %3, %6 : vector<16x16xi32>
    %8 = arith.cmpi eq, %5, %7 : vector<16x16xi32>
    %9 = arith.cmpi sge, %2, %3 : vector<16x16xi32>
    %10 = arith.andi %8, %9 : vector<16x16xi1>
    %cst = arith.constant 0.000000e+00 : f32
    %cst_4 = arith.constant -1.000000e+09 : f32
    %11 = vector.broadcast %cst : f32 to vector<16x16xf32>
    %12 = vector.broadcast %cst_4 : f32 to vector<16x16xf32>
    %13 = arith.select %10, %11, %12 : vector<16x16xi1>, vector<16x16xf32>
    %14 = tpu.iota {dimensions = array<i32: 0>} : vector<16x32xi32>
    %15 = tpu.iota {dimensions = array<i32: 1>} : vector<16x32xi32>
    %c3_i32_5 = arith.constant 3 : i32
    %16 = vector.broadcast %c3_i32_5 : i32 to vector<16x32xi32>
    %17 = arith.shrsi %14, %16 : vector<16x32xi32>
    %c4_i32 = arith.constant 4 : i32
    %18 = vector.broadcast %c4_i32 : i32 to vector<16x32xi32>
    %19 = arith.shrsi %15, %18 : vector<16x32xi32>
    %20 = arith.cmpi eq, %17, %19 : vector<16x32xi32>
    %c0_6 = arith.constant 0 : index
    %c0_7 = arith.constant 0 : index
    %21 = vector.load %arg2[%c0_6, %c0_7] : memref<1x32xf32, #tpu.memory_space<vmem>>, vector<1x32xf32>
    %cst_8 = arith.constant 5.000000e-01 : f32
    %22 = vector.broadcast %cst_8 : f32 to vector<1x32xf32>
    %23 = arith.cmpf ogt, %21, %22 : vector<1x32xf32>
    %24 = vector.broadcast %23 : vector<1x32xi1> to vector<16x32xi1>
    %25 = arith.andi %20, %24 : vector<16x32xi1>
    %cst_9 = arith.constant 0.000000e+00 : f32
    %cst_10 = arith.constant -1.000000e+09 : f32
    %26 = vector.broadcast %cst_9 : f32 to vector<16x32xf32>
    %27 = vector.broadcast %cst_10 : f32 to vector<16x32xf32>
    %28 = arith.select %25, %26, %27 : vector<16x32xi1>, vector<16x32xf32>
    %c0_11 = arith.constant 0 : index
    %c128 = arith.constant 128 : index
    %29 = vector.load %arg3[%c0_11, %c128] : memref<32x448xbf16, #tpu.memory_space<vmem>>, vector<32x96xbf16>
    %30 = arith.truncf %0 : vector<16x32xf32> to vector<16x32xbf16>
    %cst_12 = arith.constant dense<0.000000e+00> : vector<16x96xf32>
    %31 = tpu.matmul %30, %29, %cst_12 {dimension_numbers = #tpu.dot_dimension_numbers<[1], [0], [0], [1], [0, 0, 1, 1], [], []>} : vector<16x32xbf16>, vector<32x96xbf16>, vector<16x96xf32> -> vector<16x96xf32>
    %c0_13 = arith.constant 0 : index
    %c128_14 = arith.constant 128 : index
    %32 = vector.load %arg5[%c0_13, %c128_14] : memref<1x672xf32, #tpu.memory_space<vmem>>, vector<1x96xf32>
    %33 = vector.broadcast %32 : vector<1x96xf32> to vector<16x96xf32>
    %34 = arith.addf %31, %33 : vector<16x96xf32>
    %35 = arith.truncf %34 : vector<16x96xf32> to vector<16x96xbf16>
    %c0_15 = arith.constant 0 : index
    %c224 = arith.constant 224 : index
    %36 = vector.load %arg3[%c0_15, %c224] : memref<32x448xbf16, #tpu.memory_space<vmem>>, vector<32x32xbf16>
    %37 = arith.extf %36 : vector<32x32xbf16> to vector<32x32xf32>
    %cst_16 = arith.constant 0.000000e+00 : f32
    %38 = vector.broadcast %cst_16 : f32 to vector<16x32xf32>
    %39 = vector.extract_strided_slice %35 {offsets = [0, 0], sizes = [16, 8], strides = [1, 1]} : vector<16x96xbf16> to vector<16x8xbf16>
    %40 = vector.extract_strided_slice %35 {offsets = [0, 32], sizes = [16, 8], strides = [1, 1]} : vector<16x96xbf16> to vector<16x8xbf16>
    %cst_17 = arith.constant dense<0.000000e+00> : vector<16x16xf32>
    %41 = tpu.matmul %39, %40, %cst_17 {dimension_numbers = #tpu.dot_dimension_numbers<[1], [1], [0], [0], [0, 0, 1, 0], [], []>} : vector<16x8xbf16>, vector<16x8xbf16>, vector<16x16xf32> -> vector<16x16xf32>
    %42 = arith.addf %41, %13 : vector<16x16xf32>
    %cst_18 = arith.constant dense<0xFF800000> : vector<16xf32>
    %43 = vector.multi_reduction <maximumf>, %42, %cst_18 [1] : vector<16x16xf32> to vector<16xf32>
    %44 = vector.shape_cast %43 : vector<16xf32> to vector<16x1xf32>
    %45 = vector.broadcast %44 : vector<16x1xf32> to vector<16x16xf32>
    %46 = arith.subf %42, %45 : vector<16x16xf32>
    %47 = math.exp %46 : vector<16x16xf32>
    %cst_19 = arith.constant dense<0.000000e+00> : vector<16xf32>
    %48 = vector.multi_reduction <add>, %47, %cst_19 [1] : vector<16x16xf32> to vector<16xf32>
    %49 = vector.shape_cast %48 : vector<16xf32> to vector<16x1xf32>
    %50 = tpu.reciprocal %49 {approx = true} : vector<16x1xf32> -> vector<16x1xf32>
    %51 = vector.broadcast %50 : vector<16x1xf32> to vector<16x16xf32>
    %52 = arith.mulf %47, %51 : vector<16x16xf32>
    %53 = arith.truncf %52 : vector<16x16xf32> to vector<16x16xbf16>
    %54 = vector.extract_strided_slice %35 {offsets = [0, 64], sizes = [16, 8], strides = [1, 1]} : vector<16x96xbf16> to vector<16x8xbf16>
    %cst_20 = arith.constant dense<0.000000e+00> : vector<16x8xf32>
    %55 = tpu.matmul %53, %54, %cst_20 {dimension_numbers = #tpu.dot_dimension_numbers<[1], [0], [0], [1], [0, 0, 1, 1], [], []>} : vector<16x16xbf16>, vector<16x8xbf16>, vector<16x8xf32> -> vector<16x8xf32>
    %56 = vector.extract_strided_slice %37 {offsets = [0, 0], sizes = [8, 32], strides = [1, 1]} : vector<32x32xf32> to vector<8x32xf32>
    %cst_21 = arith.constant dense<0.000000e+00> : vector<16x32xf32>
    %57 = tpu.matmul %55, %56, %cst_21 {dimension_numbers = #tpu.dot_dimension_numbers<[1], [0], [0], [1], [0, 0, 1, 1], [], []>} : vector<16x8xf32>, vector<8x32xf32>, vector<16x32xf32> -> vector<16x32xf32>
    %58 = arith.addf %38, %57 : vector<16x32xf32>
    %59 = vector.extract_strided_slice %35 {offsets = [0, 8], sizes = [16, 8], strides = [1, 1]} : vector<16x96xbf16> to vector<16x8xbf16>
    %60 = vector.extract_strided_slice %35 {offsets = [0, 40], sizes = [16, 8], strides = [1, 1]} : vector<16x96xbf16> to vector<16x8xbf16>
    %cst_22 = arith.constant dense<0.000000e+00> : vector<16x16xf32>
    %61 = tpu.matmul %59, %60, %cst_22 {dimension_numbers = #tpu.dot_dimension_numbers<[1], [1], [0], [0], [0, 0, 1, 0], [], []>} : vector<16x8xbf16>, vector<16x8xbf16>, vector<16x16xf32> -> vector<16x16xf32>
    %62 = arith.addf %61, %13 : vector<16x16xf32>
    %cst_23 = arith.constant dense<0xFF800000> : vector<16xf32>
    %63 = vector.multi_reduction <maximumf>, %62, %cst_23 [1] : vector<16x16xf32> to vector<16xf32>
    %64 = vector.shape_cast %63 : vector<16xf32> to vector<16x1xf32>
    %65 = vector.broadcast %64 : vector<16x1xf32> to vector<16x16xf32>
    %66 = arith.subf %62, %65 : vector<16x16xf32>
    %67 = math.exp %66 : vector<16x16xf32>
    %cst_24 = arith.constant dense<0.000000e+00> : vector<16xf32>
    %68 = vector.multi_reduction <add>, %67, %cst_24 [1] : vector<16x16xf32> to vector<16xf32>
    %69 = vector.shape_cast %68 : vector<16xf32> to vector<16x1xf32>
    %70 = tpu.reciprocal %69 {approx = true} : vector<16x1xf32> -> vector<16x1xf32>
    %71 = vector.broadcast %70 : vector<16x1xf32> to vector<16x16xf32>
    %72 = arith.mulf %67, %71 : vector<16x16xf32>
    %73 = arith.truncf %72 : vector<16x16xf32> to vector<16x16xbf16>
    %74 = vector.extract_strided_slice %35 {offsets = [0, 72], sizes = [16, 8], strides = [1, 1]} : vector<16x96xbf16> to vector<16x8xbf16>
    %cst_25 = arith.constant dense<0.000000e+00> : vector<16x8xf32>
    %75 = tpu.matmul %73, %74, %cst_25 {dimension_numbers = #tpu.dot_dimension_numbers<[1], [0], [0], [1], [0, 0, 1, 1], [], []>} : vector<16x16xbf16>, vector<16x8xbf16>, vector<16x8xf32> -> vector<16x8xf32>
    %76 = vector.extract_strided_slice %37 {offsets = [8, 0], sizes = [8, 32], strides = [1, 1]} : vector<32x32xf32> to vector<8x32xf32>
    %cst_26 = arith.constant dense<0.000000e+00> : vector<16x32xf32>
    %77 = tpu.matmul %75, %76, %cst_26 {dimension_numbers = #tpu.dot_dimension_numbers<[1], [0], [0], [1], [0, 0, 1, 1], [], []>} : vector<16x8xf32>, vector<8x32xf32>, vector<16x32xf32> -> vector<16x32xf32>
    %78 = arith.addf %58, %77 : vector<16x32xf32>
    %79 = vector.extract_strided_slice %35 {offsets = [0, 16], sizes = [16, 8], strides = [1, 1]} : vector<16x96xbf16> to vector<16x8xbf16>
    %80 = vector.extract_strided_slice %35 {offsets = [0, 48], sizes = [16, 8], strides = [1, 1]} : vector<16x96xbf16> to vector<16x8xbf16>
    %cst_27 = arith.constant dense<0.000000e+00> : vector<16x16xf32>
    %81 = tpu.matmul %79, %80, %cst_27 {dimension_numbers = #tpu.dot_dimension_numbers<[1], [1], [0], [0], [0, 0, 1, 0], [], []>} : vector<16x8xbf16>, vector<16x8xbf16>, vector<16x16xf32> -> vector<16x16xf32>
    %82 = arith.addf %81, %13 : vector<16x16xf32>
    %cst_28 = arith.constant dense<0xFF800000> : vector<16xf32>
    %83 = vector.multi_reduction <maximumf>, %82, %cst_28 [1] : vector<16x16xf32> to vector<16xf32>
    %84 = vector.shape_cast %83 : vector<16xf32> to vector<16x1xf32>
    %85 = vector.broadcast %84 : vector<16x1xf32> to vector<16x16xf32>
    %86 = arith.subf %82, %85 : vector<16x16xf32>
    %87 = math.exp %86 : vector<16x16xf32>
    %cst_29 = arith.constant dense<0.000000e+00> : vector<16xf32>
    %88 = vector.multi_reduction <add>, %87, %cst_29 [1] : vector<16x16xf32> to vector<16xf32>
    %89 = vector.shape_cast %88 : vector<16xf32> to vector<16x1xf32>
    %90 = tpu.reciprocal %89 {approx = true} : vector<16x1xf32> -> vector<16x1xf32>
    %91 = vector.broadcast %90 : vector<16x1xf32> to vector<16x16xf32>
    %92 = arith.mulf %87, %91 : vector<16x16xf32>
    %93 = arith.truncf %92 : vector<16x16xf32> to vector<16x16xbf16>
    %94 = vector.extract_strided_slice %35 {offsets = [0, 80], sizes = [16, 8], strides = [1, 1]} : vector<16x96xbf16> to vector<16x8xbf16>
    %cst_30 = arith.constant dense<0.000000e+00> : vector<16x8xf32>
    %95 = tpu.matmul %93, %94, %cst_30 {dimension_numbers = #tpu.dot_dimension_numbers<[1], [0], [0], [1], [0, 0, 1, 1], [], []>} : vector<16x16xbf16>, vector<16x8xbf16>, vector<16x8xf32> -> vector<16x8xf32>
    %96 = vector.extract_strided_slice %37 {offsets = [16, 0], sizes = [8, 32], strides = [1, 1]} : vector<32x32xf32> to vector<8x32xf32>
    %cst_31 = arith.constant dense<0.000000e+00> : vector<16x32xf32>
    %97 = tpu.matmul %95, %96, %cst_31 {dimension_numbers = #tpu.dot_dimension_numbers<[1], [0], [0], [1], [0, 0, 1, 1], [], []>} : vector<16x8xf32>, vector<8x32xf32>, vector<16x32xf32> -> vector<16x32xf32>
    %98 = arith.addf %78, %97 : vector<16x32xf32>
    %99 = vector.extract_strided_slice %35 {offsets = [0, 24], sizes = [16, 8], strides = [1, 1]} : vector<16x96xbf16> to vector<16x8xbf16>
    %100 = vector.extract_strided_slice %35 {offsets = [0, 56], sizes = [16, 8], strides = [1, 1]} : vector<16x96xbf16> to vector<16x8xbf16>
    %cst_32 = arith.constant dense<0.000000e+00> : vector<16x16xf32>
    %101 = tpu.matmul %99, %100, %cst_32 {dimension_numbers = #tpu.dot_dimension_numbers<[1], [1], [0], [0], [0, 0, 1, 0], [], []>} : vector<16x8xbf16>, vector<16x8xbf16>, vector<16x16xf32> -> vector<16x16xf32>
    %102 = arith.addf %101, %13 : vector<16x16xf32>
    %cst_33 = arith.constant dense<0xFF800000> : vector<16xf32>
    %103 = vector.multi_reduction <maximumf>, %102, %cst_33 [1] : vector<16x16xf32> to vector<16xf32>
    %104 = vector.shape_cast %103 : vector<16xf32> to vector<16x1xf32>
    %105 = vector.broadcast %104 : vector<16x1xf32> to vector<16x16xf32>
    %106 = arith.subf %102, %105 : vector<16x16xf32>
    %107 = math.exp %106 : vector<16x16xf32>
    %cst_34 = arith.constant dense<0.000000e+00> : vector<16xf32>
    %108 = vector.multi_reduction <add>, %107, %cst_34 [1] : vector<16x16xf32> to vector<16xf32>
    %109 = vector.shape_cast %108 : vector<16xf32> to vector<16x1xf32>
    %110 = tpu.reciprocal %109 {approx = true} : vector<16x1xf32> -> vector<16x1xf32>
    %111 = vector.broadcast %110 : vector<16x1xf32> to vector<16x16xf32>
    %112 = arith.mulf %107, %111 : vector<16x16xf32>
    %113 = arith.truncf %112 : vector<16x16xf32> to vector<16x16xbf16>
    %114 = vector.extract_strided_slice %35 {offsets = [0, 88], sizes = [16, 8], strides = [1, 1]} : vector<16x96xbf16> to vector<16x8xbf16>
    %cst_35 = arith.constant dense<0.000000e+00> : vector<16x8xf32>
    %115 = tpu.matmul %113, %114, %cst_35 {dimension_numbers = #tpu.dot_dimension_numbers<[1], [0], [0], [1], [0, 0, 1, 1], [], []>} : vector<16x16xbf16>, vector<16x8xbf16>, vector<16x8xf32> -> vector<16x8xf32>
    %116 = vector.extract_strided_slice %37 {offsets = [24, 0], sizes = [8, 32], strides = [1, 1]} : vector<32x32xf32> to vector<8x32xf32>
    %cst_36 = arith.constant dense<0.000000e+00> : vector<16x32xf32>
    %117 = tpu.matmul %115, %116, %cst_36 {dimension_numbers = #tpu.dot_dimension_numbers<[1], [0], [0], [1], [0, 0, 1, 1], [], []>} : vector<16x8xf32>, vector<8x32xf32>, vector<16x32xf32> -> vector<16x32xf32>
    %118 = arith.addf %98, %117 : vector<16x32xf32>
    %c0_37 = arith.constant 0 : index
    %c224_38 = arith.constant 224 : index
    %119 = vector.load %arg5[%c0_37, %c224_38] : memref<1x672xf32, #tpu.memory_space<vmem>>, vector<1x32xf32>
    %120 = vector.broadcast %119 : vector<1x32xf32> to vector<16x32xf32>
    %121 = arith.addf %118, %120 : vector<16x32xf32>
    %122 = arith.addf %0, %121 : vector<16x32xf32>
    %c0_39 = arith.constant 0 : index
    %c384 = arith.constant 384 : index
    %123 = vector.load %arg5[%c0_39, %c384] : memref<1x672xf32, #tpu.memory_space<vmem>>, vector<1x32xf32>
    %c0_40 = arith.constant 0 : index
    %c416 = arith.constant 416 : index
    %124 = vector.load %arg5[%c0_40, %c416] : memref<1x672xf32, #tpu.memory_space<vmem>>, vector<1x32xf32>
    %cst_41 = arith.constant dense<0.000000e+00> : vector<16xf32>
    %125 = vector.multi_reduction <add>, %122, %cst_41 [1] : vector<16x32xf32> to vector<16xf32>
    %126 = vector.shape_cast %125 : vector<16xf32> to vector<16x1xf32>
    %cst_42 = arith.constant 3.200000e+01 : f32
    %127 = vector.broadcast %cst_42 : f32 to vector<16x1xf32>
    %128 = arith.divf %126, %127 : vector<16x1xf32>
    %129 = vector.broadcast %128 : vector<16x1xf32> to vector<16x32xf32>
    %130 = arith.subf %122, %129 : vector<16x32xf32>
    %131 = arith.mulf %130, %130 : vector<16x32xf32>
    %cst_43 = arith.constant dense<0.000000e+00> : vector<16xf32>
    %132 = vector.multi_reduction <add>, %131, %cst_43 [1] : vector<16x32xf32> to vector<16xf32>
    %133 = vector.shape_cast %132 : vector<16xf32> to vector<16x1xf32>
    %cst_44 = arith.constant 3.200000e+01 : f32
    %134 = vector.broadcast %cst_44 : f32 to vector<16x1xf32>
    %135 = arith.divf %133, %134 : vector<16x1xf32>
    %136 = vector.broadcast %128 : vector<16x1xf32> to vector<16x32xf32>
    %137 = arith.subf %122, %136 : vector<16x32xf32>
    %cst_45 = arith.constant 9.99999974E-6 : f32
    %138 = vector.broadcast %cst_45 : f32 to vector<16x1xf32>
    %139 = arith.addf %135, %138 : vector<16x1xf32>
    %140 = math.rsqrt %139 : vector<16x1xf32>
    %141 = vector.broadcast %140 : vector<16x1xf32> to vector<16x32xf32>
    %142 = arith.mulf %137, %141 : vector<16x32xf32>
    %143 = vector.broadcast %123 : vector<1x32xf32> to vector<16x32xf32>
    %144 = arith.mulf %142, %143 : vector<16x32xf32>
    %145 = vector.broadcast %124 : vector<1x32xf32> to vector<16x32xf32>
    %146 = arith.addf %144, %145 : vector<16x32xf32>
    %c0_46 = arith.constant 0 : index
    %c256 = arith.constant 256 : index
    %147 = vector.load %arg3[%c0_46, %c256] : memref<32x448xbf16, #tpu.memory_space<vmem>>, vector<32x32xbf16>
    %148 = arith.truncf %146 : vector<16x32xf32> to vector<16x32xbf16>
    %cst_47 = arith.constant dense<0.000000e+00> : vector<16x32xf32>
    %149 = tpu.matmul %148, %147, %cst_47 {dimension_numbers = #tpu.dot_dimension_numbers<[1], [0], [0], [1], [0, 0, 1, 1], [], []>} : vector<16x32xbf16>, vector<32x32xbf16>, vector<16x32xf32> -> vector<16x32xf32>
    %c0_48 = arith.constant 0 : index
    %c448 = arith.constant 448 : index
    %150 = vector.load %arg5[%c0_48, %c448] : memref<1x672xf32, #tpu.memory_space<vmem>>, vector<1x32xf32>
    %151 = vector.broadcast %150 : vector<1x32xf32> to vector<16x32xf32>
    %152 = arith.addf %149, %151 : vector<16x32xf32>
    %153 = arith.truncf %152 : vector<16x32xf32> to vector<16x32xbf16>
    %c0_49 = arith.constant 0 : index
    %c288 = arith.constant 288 : index
    %154 = vector.load %arg3[%c0_49, %c288] : memref<32x448xbf16, #tpu.memory_space<vmem>>, vector<32x64xbf16>
    %155 = arith.truncf %1 : vector<32x32xf32> to vector<32x32xbf16>
    %cst_50 = arith.constant dense<0.000000e+00> : vector<32x64xf32>
    %156 = tpu.matmul %155, %154, %cst_50 {dimension_numbers = #tpu.dot_dimension_numbers<[1], [0], [0], [1], [0, 0, 1, 1], [], []>} : vector<32x32xbf16>, vector<32x64xbf16>, vector<32x64xf32> -> vector<32x64xf32>
    %c0_51 = arith.constant 0 : index
    %c256_52 = arith.constant 256 : index
    %157 = vector.load %arg5[%c0_51, %c256_52] : memref<1x672xf32, #tpu.memory_space<vmem>>, vector<1x64xf32>
    %158 = vector.broadcast %157 : vector<1x64xf32> to vector<32x64xf32>
    %159 = arith.addf %156, %158 : vector<32x64xf32>
    %160 = arith.truncf %159 : vector<32x64xf32> to vector<32x64xbf16>
    %c0_53 = arith.constant 0 : index
    %c352 = arith.constant 352 : index
    %161 = vector.load %arg3[%c0_53, %c352] : memref<32x448xbf16, #tpu.memory_space<vmem>>, vector<32x32xbf16>
    %162 = arith.extf %161 : vector<32x32xbf16> to vector<32x32xf32>
    %cst_54 = arith.constant 0.000000e+00 : f32
    %163 = vector.broadcast %cst_54 : f32 to vector<16x32xf32>
    %164 = vector.extract_strided_slice %153 {offsets = [0, 0], sizes = [16, 8], strides = [1, 1]} : vector<16x32xbf16> to vector<16x8xbf16>
    %165 = vector.extract_strided_slice %160 {offsets = [0, 0], sizes = [32, 8], strides = [1, 1]} : vector<32x64xbf16> to vector<32x8xbf16>
    %cst_55 = arith.constant dense<0.000000e+00> : vector<16x32xf32>
    %166 = tpu.matmul %164, %165, %cst_55 {dimension_numbers = #tpu.dot_dimension_numbers<[1], [1], [0], [0], [0, 0, 1, 0], [], []>} : vector<16x8xbf16>, vector<32x8xbf16>, vector<16x32xf32> -> vector<16x32xf32>
    %167 = arith.addf %166, %28 : vector<16x32xf32>
    %cst_56 = arith.constant dense<0xFF800000> : vector<16xf32>
    %168 = vector.multi_reduction <maximumf>, %167, %cst_56 [1] : vector<16x32xf32> to vector<16xf32>
    %169 = vector.shape_cast %168 : vector<16xf32> to vector<16x1xf32>
    %170 = vector.broadcast %169 : vector<16x1xf32> to vector<16x32xf32>
    %171 = arith.subf %167, %170 : vector<16x32xf32>
    %172 = math.exp %171 : vector<16x32xf32>
    %cst_57 = arith.constant dense<0.000000e+00> : vector<16xf32>
    %173 = vector.multi_reduction <add>, %172, %cst_57 [1] : vector<16x32xf32> to vector<16xf32>
    %174 = vector.shape_cast %173 : vector<16xf32> to vector<16x1xf32>
    %175 = tpu.reciprocal %174 {approx = true} : vector<16x1xf32> -> vector<16x1xf32>
    %176 = vector.broadcast %175 : vector<16x1xf32> to vector<16x32xf32>
    %177 = arith.mulf %172, %176 : vector<16x32xf32>
    %178 = arith.truncf %177 : vector<16x32xf32> to vector<16x32xbf16>
    %179 = vector.extract_strided_slice %160 {offsets = [0, 32], sizes = [32, 8], strides = [1, 1]} : vector<32x64xbf16> to vector<32x8xbf16>
    %cst_58 = arith.constant dense<0.000000e+00> : vector<16x8xf32>
    %180 = tpu.matmul %178, %179, %cst_58 {dimension_numbers = #tpu.dot_dimension_numbers<[1], [0], [0], [1], [0, 0, 1, 1], [], []>} : vector<16x32xbf16>, vector<32x8xbf16>, vector<16x8xf32> -> vector<16x8xf32>
    %181 = vector.extract_strided_slice %162 {offsets = [0, 0], sizes = [8, 32], strides = [1, 1]} : vector<32x32xf32> to vector<8x32xf32>
    %cst_59 = arith.constant dense<0.000000e+00> : vector<16x32xf32>
    %182 = tpu.matmul %180, %181, %cst_59 {dimension_numbers = #tpu.dot_dimension_numbers<[1], [0], [0], [1], [0, 0, 1, 1], [], []>} : vector<16x8xf32>, vector<8x32xf32>, vector<16x32xf32> -> vector<16x32xf32>
    %183 = arith.addf %163, %182 : vector<16x32xf32>
    %184 = vector.extract_strided_slice %153 {offsets = [0, 8], sizes = [16, 8], strides = [1, 1]} : vector<16x32xbf16> to vector<16x8xbf16>
    %185 = vector.extract_strided_slice %160 {offsets = [0, 8], sizes = [32, 8], strides = [1, 1]} : vector<32x64xbf16> to vector<32x8xbf16>
    %cst_60 = arith.constant dense<0.000000e+00> : vector<16x32xf32>
    %186 = tpu.matmul %184, %185, %cst_60 {dimension_numbers = #tpu.dot_dimension_numbers<[1], [1], [0], [0], [0, 0, 1, 0], [], []>} : vector<16x8xbf16>, vector<32x8xbf16>, vector<16x32xf32> -> vector<16x32xf32>
    %187 = arith.addf %186, %28 : vector<16x32xf32>
    %cst_61 = arith.constant dense<0xFF800000> : vector<16xf32>
    %188 = vector.multi_reduction <maximumf>, %187, %cst_61 [1] : vector<16x32xf32> to vector<16xf32>
    %189 = vector.shape_cast %188 : vector<16xf32> to vector<16x1xf32>
    %190 = vector.broadcast %189 : vector<16x1xf32> to vector<16x32xf32>
    %191 = arith.subf %187, %190 : vector<16x32xf32>
    %192 = math.exp %191 : vector<16x32xf32>
    %cst_62 = arith.constant dense<0.000000e+00> : vector<16xf32>
    %193 = vector.multi_reduction <add>, %192, %cst_62 [1] : vector<16x32xf32> to vector<16xf32>
    %194 = vector.shape_cast %193 : vector<16xf32> to vector<16x1xf32>
    %195 = tpu.reciprocal %194 {approx = true} : vector<16x1xf32> -> vector<16x1xf32>
    %196 = vector.broadcast %195 : vector<16x1xf32> to vector<16x32xf32>
    %197 = arith.mulf %192, %196 : vector<16x32xf32>
    %198 = arith.truncf %197 : vector<16x32xf32> to vector<16x32xbf16>
    %199 = vector.extract_strided_slice %160 {offsets = [0, 40], sizes = [32, 8], strides = [1, 1]} : vector<32x64xbf16> to vector<32x8xbf16>
    %cst_63 = arith.constant dense<0.000000e+00> : vector<16x8xf32>
    %200 = tpu.matmul %198, %199, %cst_63 {dimension_numbers = #tpu.dot_dimension_numbers<[1], [0], [0], [1], [0, 0, 1, 1], [], []>} : vector<16x32xbf16>, vector<32x8xbf16>, vector<16x8xf32> -> vector<16x8xf32>
    %201 = vector.extract_strided_slice %162 {offsets = [8, 0], sizes = [8, 32], strides = [1, 1]} : vector<32x32xf32> to vector<8x32xf32>
    %cst_64 = arith.constant dense<0.000000e+00> : vector<16x32xf32>
    %202 = tpu.matmul %200, %201, %cst_64 {dimension_numbers = #tpu.dot_dimension_numbers<[1], [0], [0], [1], [0, 0, 1, 1], [], []>} : vector<16x8xf32>, vector<8x32xf32>, vector<16x32xf32> -> vector<16x32xf32>
    %203 = arith.addf %183, %202 : vector<16x32xf32>
    %204 = vector.extract_strided_slice %153 {offsets = [0, 16], sizes = [16, 8], strides = [1, 1]} : vector<16x32xbf16> to vector<16x8xbf16>
    %205 = vector.extract_strided_slice %160 {offsets = [0, 16], sizes = [32, 8], strides = [1, 1]} : vector<32x64xbf16> to vector<32x8xbf16>
    %cst_65 = arith.constant dense<0.000000e+00> : vector<16x32xf32>
    %206 = tpu.matmul %204, %205, %cst_65 {dimension_numbers = #tpu.dot_dimension_numbers<[1], [1], [0], [0], [0, 0, 1, 0], [], []>} : vector<16x8xbf16>, vector<32x8xbf16>, vector<16x32xf32> -> vector<16x32xf32>
    %207 = arith.addf %206, %28 : vector<16x32xf32>
    %cst_66 = arith.constant dense<0xFF800000> : vector<16xf32>
    %208 = vector.multi_reduction <maximumf>, %207, %cst_66 [1] : vector<16x32xf32> to vector<16xf32>
    %209 = vector.shape_cast %208 : vector<16xf32> to vector<16x1xf32>
    %210 = vector.broadcast %209 : vector<16x1xf32> to vector<16x32xf32>
    %211 = arith.subf %207, %210 : vector<16x32xf32>
    %212 = math.exp %211 : vector<16x32xf32>
    %cst_67 = arith.constant dense<0.000000e+00> : vector<16xf32>
    %213 = vector.multi_reduction <add>, %212, %cst_67 [1] : vector<16x32xf32> to vector<16xf32>
    %214 = vector.shape_cast %213 : vector<16xf32> to vector<16x1xf32>
    %215 = tpu.reciprocal %214 {approx = true} : vector<16x1xf32> -> vector<16x1xf32>
    %216 = vector.broadcast %215 : vector<16x1xf32> to vector<16x32xf32>
    %217 = arith.mulf %212, %216 : vector<16x32xf32>
    %218 = arith.truncf %217 : vector<16x32xf32> to vector<16x32xbf16>
    %219 = vector.extract_strided_slice %160 {offsets = [0, 48], sizes = [32, 8], strides = [1, 1]} : vector<32x64xbf16> to vector<32x8xbf16>
    %cst_68 = arith.constant dense<0.000000e+00> : vector<16x8xf32>
    %220 = tpu.matmul %218, %219, %cst_68 {dimension_numbers = #tpu.dot_dimension_numbers<[1], [0], [0], [1], [0, 0, 1, 1], [], []>} : vector<16x32xbf16>, vector<32x8xbf16>, vector<16x8xf32> -> vector<16x8xf32>
    %221 = vector.extract_strided_slice %162 {offsets = [16, 0], sizes = [8, 32], strides = [1, 1]} : vector<32x32xf32> to vector<8x32xf32>
    %cst_69 = arith.constant dense<0.000000e+00> : vector<16x32xf32>
    %222 = tpu.matmul %220, %221, %cst_69 {dimension_numbers = #tpu.dot_dimension_numbers<[1], [0], [0], [1], [0, 0, 1, 1], [], []>} : vector<16x8xf32>, vector<8x32xf32>, vector<16x32xf32> -> vector<16x32xf32>
    %223 = arith.addf %203, %222 : vector<16x32xf32>
    %224 = vector.extract_strided_slice %153 {offsets = [0, 24], sizes = [16, 8], strides = [1, 1]} : vector<16x32xbf16> to vector<16x8xbf16>
    %225 = vector.extract_strided_slice %160 {offsets = [0, 24], sizes = [32, 8], strides = [1, 1]} : vector<32x64xbf16> to vector<32x8xbf16>
    %cst_70 = arith.constant dense<0.000000e+00> : vector<16x32xf32>
    %226 = tpu.matmul %224, %225, %cst_70 {dimension_numbers = #tpu.dot_dimension_numbers<[1], [1], [0], [0], [0, 0, 1, 0], [], []>} : vector<16x8xbf16>, vector<32x8xbf16>, vector<16x32xf32> -> vector<16x32xf32>
    %227 = arith.addf %226, %28 : vector<16x32xf32>
    %cst_71 = arith.constant dense<0xFF800000> : vector<16xf32>
    %228 = vector.multi_reduction <maximumf>, %227, %cst_71 [1] : vector<16x32xf32> to vector<16xf32>
    %229 = vector.shape_cast %228 : vector<16xf32> to vector<16x1xf32>
    %230 = vector.broadcast %229 : vector<16x1xf32> to vector<16x32xf32>
    %231 = arith.subf %227, %230 : vector<16x32xf32>
    %232 = math.exp %231 : vector<16x32xf32>
    %cst_72 = arith.constant dense<0.000000e+00> : vector<16xf32>
    %233 = vector.multi_reduction <add>, %232, %cst_72 [1] : vector<16x32xf32> to vector<16xf32>
    %234 = vector.shape_cast %233 : vector<16xf32> to vector<16x1xf32>
    %235 = tpu.reciprocal %234 {approx = true} : vector<16x1xf32> -> vector<16x1xf32>
    %236 = vector.broadcast %235 : vector<16x1xf32> to vector<16x32xf32>
    %237 = arith.mulf %232, %236 : vector<16x32xf32>
    %238 = arith.truncf %237 : vector<16x32xf32> to vector<16x32xbf16>
    %239 = vector.extract_strided_slice %160 {offsets = [0, 56], sizes = [32, 8], strides = [1, 1]} : vector<32x64xbf16> to vector<32x8xbf16>
    %cst_73 = arith.constant dense<0.000000e+00> : vector<16x8xf32>
    %240 = tpu.matmul %238, %239, %cst_73 {dimension_numbers = #tpu.dot_dimension_numbers<[1], [0], [0], [1], [0, 0, 1, 1], [], []>} : vector<16x32xbf16>, vector<32x8xbf16>, vector<16x8xf32> -> vector<16x8xf32>
    %241 = vector.extract_strided_slice %162 {offsets = [24, 0], sizes = [8, 32], strides = [1, 1]} : vector<32x32xf32> to vector<8x32xf32>
    %cst_74 = arith.constant dense<0.000000e+00> : vector<16x32xf32>
    %242 = tpu.matmul %240, %241, %cst_74 {dimension_numbers = #tpu.dot_dimension_numbers<[1], [0], [0], [1], [0, 0, 1, 1], [], []>} : vector<16x8xf32>, vector<8x32xf32>, vector<16x32xf32> -> vector<16x32xf32>
    %243 = arith.addf %223, %242 : vector<16x32xf32>
    %c0_75 = arith.constant 0 : index
    %c480 = arith.constant 480 : index
    %244 = vector.load %arg5[%c0_75, %c480] : memref<1x672xf32, #tpu.memory_space<vmem>>, vector<1x32xf32>
    %245 = vector.broadcast %244 : vector<1x32xf32> to vector<16x32xf32>
    %246 = arith.addf %243, %245 : vector<16x32xf32>
    %247 = arith.addf %146, %246 : vector<16x32xf32>
    %c0_76 = arith.constant 0 : index
    %c512 = arith.constant 512 : index
    %248 = vector.load %arg5[%c0_76, %c512] : memref<1x672xf32, #tpu.memory_space<vmem>>, vector<1x32xf32>
    %c0_77 = arith.constant 0 : index
    %c544 = arith.constant 544 : index
    %249 = vector.load %arg5[%c0_77, %c544] : memref<1x672xf32, #tpu.memory_space<vmem>>, vector<1x32xf32>
    %cst_78 = arith.constant dense<0.000000e+00> : vector<16xf32>
    %250 = vector.multi_reduction <add>, %247, %cst_78 [1] : vector<16x32xf32> to vector<16xf32>
    %251 = vector.shape_cast %250 : vector<16xf32> to vector<16x1xf32>
    %cst_79 = arith.constant 3.200000e+01 : f32
    %252 = vector.broadcast %cst_79 : f32 to vector<16x1xf32>
    %253 = arith.divf %251, %252 : vector<16x1xf32>
    %254 = vector.broadcast %253 : vector<16x1xf32> to vector<16x32xf32>
    %255 = arith.subf %247, %254 : vector<16x32xf32>
    %256 = arith.mulf %255, %255 : vector<16x32xf32>
    %cst_80 = arith.constant dense<0.000000e+00> : vector<16xf32>
    %257 = vector.multi_reduction <add>, %256, %cst_80 [1] : vector<16x32xf32> to vector<16xf32>
    %258 = vector.shape_cast %257 : vector<16xf32> to vector<16x1xf32>
    %cst_81 = arith.constant 3.200000e+01 : f32
    %259 = vector.broadcast %cst_81 : f32 to vector<16x1xf32>
    %260 = arith.divf %258, %259 : vector<16x1xf32>
    %261 = vector.broadcast %253 : vector<16x1xf32> to vector<16x32xf32>
    %262 = arith.subf %247, %261 : vector<16x32xf32>
    %cst_82 = arith.constant 9.99999974E-6 : f32
    %263 = vector.broadcast %cst_82 : f32 to vector<16x1xf32>
    %264 = arith.addf %260, %263 : vector<16x1xf32>
    %265 = math.rsqrt %264 : vector<16x1xf32>
    %266 = vector.broadcast %265 : vector<16x1xf32> to vector<16x32xf32>
    %267 = arith.mulf %262, %266 : vector<16x32xf32>
    %268 = vector.broadcast %248 : vector<1x32xf32> to vector<16x32xf32>
    %269 = arith.mulf %267, %268 : vector<16x32xf32>
    %270 = vector.broadcast %249 : vector<1x32xf32> to vector<16x32xf32>
    %271 = arith.addf %269, %270 : vector<16x32xf32>
    %c0_83 = arith.constant 0 : index
    %c384_84 = arith.constant 384 : index
    %272 = vector.load %arg3[%c0_83, %c384_84] : memref<32x448xbf16, #tpu.memory_space<vmem>>, vector<32x64xbf16>
    %273 = arith.truncf %271 : vector<16x32xf32> to vector<16x32xbf16>
    %cst_85 = arith.constant dense<0.000000e+00> : vector<16x64xf32>
    %274 = tpu.matmul %273, %272, %cst_85 {dimension_numbers = #tpu.dot_dimension_numbers<[1], [0], [0], [1], [0, 0, 1, 1], [], []>} : vector<16x32xbf16>, vector<32x64xbf16>, vector<16x64xf32> -> vector<16x64xf32>
    %c0_86 = arith.constant 0 : index
    %c320 = arith.constant 320 : index
    %275 = vector.load %arg5[%c0_86, %c320] : memref<1x672xf32, #tpu.memory_space<vmem>>, vector<1x64xf32>
    %276 = vector.broadcast %275 : vector<1x64xf32> to vector<16x64xf32>
    %277 = arith.addf %274, %276 : vector<16x64xf32>
    %cst_87 = arith.constant 0.000000e+00 : f32
    %278 = vector.broadcast %cst_87 : f32 to vector<16x64xf32>
    %279 = arith.maximumf %277, %278 : vector<16x64xf32>
    %c0_88 = arith.constant 0 : index
    %c0_89 = arith.constant 0 : index
    %280 = vector.load %arg4[%c0_88, %c0_89] : memref<64x32xbf16, #tpu.memory_space<vmem>>, vector<64x32xbf16>
    %281 = arith.truncf %279 : vector<16x64xf32> to vector<16x64xbf16>
    %cst_90 = arith.constant dense<0.000000e+00> : vector<16x32xf32>
    %282 = tpu.matmul %281, %280, %cst_90 {dimension_numbers = #tpu.dot_dimension_numbers<[1], [0], [0], [1], [0, 0, 1, 1], [], []>} : vector<16x64xbf16>, vector<64x32xbf16>, vector<16x32xf32> -> vector<16x32xf32>
    %c0_91 = arith.constant 0 : index
    %c576 = arith.constant 576 : index
    %283 = vector.load %arg5[%c0_91, %c576] : memref<1x672xf32, #tpu.memory_space<vmem>>, vector<1x32xf32>
    %284 = vector.broadcast %283 : vector<1x32xf32> to vector<16x32xf32>
    %285 = arith.addf %282, %284 : vector<16x32xf32>
    %286 = arith.addf %271, %285 : vector<16x32xf32>
    %c0_92 = arith.constant 0 : index
    %c608 = arith.constant 608 : index
    %287 = vector.load %arg5[%c0_92, %c608] : memref<1x672xf32, #tpu.memory_space<vmem>>, vector<1x32xf32>
    %c0_93 = arith.constant 0 : index
    %c640 = arith.constant 640 : index
    %288 = vector.load %arg5[%c0_93, %c640] : memref<1x672xf32, #tpu.memory_space<vmem>>, vector<1x32xf32>
    %cst_94 = arith.constant dense<0.000000e+00> : vector<16xf32>
    %289 = vector.multi_reduction <add>, %286, %cst_94 [1] : vector<16x32xf32> to vector<16xf32>
    %290 = vector.shape_cast %289 : vector<16xf32> to vector<16x1xf32>
    %cst_95 = arith.constant 3.200000e+01 : f32
    %291 = vector.broadcast %cst_95 : f32 to vector<16x1xf32>
    %292 = arith.divf %290, %291 : vector<16x1xf32>
    %293 = vector.broadcast %292 : vector<16x1xf32> to vector<16x32xf32>
    %294 = arith.subf %286, %293 : vector<16x32xf32>
    %295 = arith.mulf %294, %294 : vector<16x32xf32>
    %cst_96 = arith.constant dense<0.000000e+00> : vector<16xf32>
    %296 = vector.multi_reduction <add>, %295, %cst_96 [1] : vector<16x32xf32> to vector<16xf32>
    %297 = vector.shape_cast %296 : vector<16xf32> to vector<16x1xf32>
    %cst_97 = arith.constant 3.200000e+01 : f32
    %298 = vector.broadcast %cst_97 : f32 to vector<16x1xf32>
    %299 = arith.divf %297, %298 : vector<16x1xf32>
    %300 = vector.broadcast %292 : vector<16x1xf32> to vector<16x32xf32>
    %301 = arith.subf %286, %300 : vector<16x32xf32>
    %cst_98 = arith.constant 9.99999974E-6 : f32
    %302 = vector.broadcast %cst_98 : f32 to vector<16x1xf32>
    %303 = arith.addf %299, %302 : vector<16x1xf32>
    %304 = math.rsqrt %303 : vector<16x1xf32>
    %305 = vector.broadcast %304 : vector<16x1xf32> to vector<16x32xf32>
    %306 = arith.mulf %301, %305 : vector<16x32xf32>
    %307 = vector.broadcast %287 : vector<1x32xf32> to vector<16x32xf32>
    %308 = arith.mulf %306, %307 : vector<16x32xf32>
    %309 = vector.broadcast %288 : vector<1x32xf32> to vector<16x32xf32>
    %310 = arith.addf %308, %309 : vector<16x32xf32>
    %c0_99 = arith.constant 0 : index
    %c0_100 = arith.constant 0 : index
    %311 = vector.load %arg3[%c0_99, %c0_100] : memref<32x448xbf16, #tpu.memory_space<vmem>>, vector<32x128xbf16>
    %312 = arith.truncf %310 : vector<16x32xf32> to vector<16x32xbf16>
    %cst_101 = arith.constant dense<0.000000e+00> : vector<16x128xf32>
    %313 = tpu.matmul %312, %311, %cst_101 {dimension_numbers = #tpu.dot_dimension_numbers<[1], [0], [0], [1], [0, 0, 1, 1], [], []>} : vector<16x32xbf16>, vector<32x128xbf16>, vector<16x128xf32> -> vector<16x128xf32>
    %c0_102 = arith.constant 0 : index
    %c0_103 = arith.constant 0 : index
    %314 = vector.load %arg5[%c0_102, %c0_103] : memref<1x672xf32, #tpu.memory_space<vmem>>, vector<1x128xf32>
    %315 = vector.broadcast %314 : vector<1x128xf32> to vector<16x128xf32>
    %316 = arith.addf %313, %315 : vector<16x128xf32>
    %c0_104 = arith.constant 0 : index
    %c0_105 = arith.constant 0 : index
    %317 = vector.load %arg6[%c0_104, %c0_105] : memref<16x128xf32, #tpu.memory_space<vmem>>, vector<16x128xf32>
    tpu.vector_store %arg6[%c0_104, %c0_105], %316 {strides = array<i32>} : memref<16x128xf32, #tpu.memory_space<vmem>>, vector<16x128xf32>,
    return
  }
}

</mosaic_0001>

<bundles_post_ra>
// kernel: decoder_forward.1
= control target key start
LH: loop header
LB: loop body
LE: loop exit
PB: predicated region body
PF: predicated region fallthrough
CT: control target
= control target key end

     0   :  { %v2782_v0 = vmov 0.0   ;;  %vm2783_vm0 = vmmov 0   ;;  %vm85_vm1 = vcmask 261120   ;;  %s2784_s10 = smov 120   ;;  %s2785_s11 = smov 96   ;;  %vm138_vm2 = vcmask 64512   ;;  %s3323_s3 = inlined_call_operand.vmem [shape: bf16[32,448], index: 3, kind: input, shape index: {}]   ;;  %s3324_s0 = inlined_call_operand.vmem [shape: f32[16,32], index: 0, kind: input, shape index: {}]   ;;  %s3325_s5 = inlined_call_operand.vmem [shape: f32[1,672], index: 5, kind: input, shape index: {}]   ;;  %s3326_s1 = inlined_call_operand.vmem [shape: f32[32,32], index: 1, kind: input, shape index: {}]   ;;  %s3327_s2 = inlined_call_operand.vmem [shape: f32[1,32], index: 2, kind: input, shape index: {}]   ;;  %s3328_s4 = inlined_call_operand.vmem [shape: bf16[64,32], index: 4, kind: input, shape index: {}]   ;;  %s3329_s6 = inlined_call_operand.vmem [shape: f32[16,128], index: 6, kind: output, shape index: {}]  }
   0x1   :  { %2462 = vmatprep.subr.bf16.mxu0 %v2782_v0  ;;  %v2837_v1 = vld [vmem:[%s3323_s3 + $0x4] sm:$0xf]  ;;  %v2842_v2 = vld [vmem:[%s3323_s3 + $0x14] sm:$0xf]  ;;  %2466 = vmatprep.mubr.msk.bf16.mxu0 %vm2783_vm0, %v2782_v0  ;;  %v2869_v7 = vld [vmem:[%s3324_s0 + $0x8] sm:$0xff]  ;;  %s2786_s12 = smov 88   ;;  %v30_v23 = vlaneseq }
   0x2   :  { %v2847_v3 = vld [vmem:[%s3323_s3 + $0x24] sm:$0xf]  ;;  %v2321_v4 = vcombine.low %v2837_v1, %v2842_v2  ;;  %v2856_v5 = vld [vmem:[%s3323_s3 + $0x34] sm:$0xf]  ;;  %2470 = vmatprep.subr.bf16.mxu1 %v2782_v0  ;;  %2472 = vmatprep.mubr.msk.bf16.mxu1 %vm2783_vm0, %v2782_v0  ;;  %v2883_v10 = vld [vmem:[%s3325_s5 + $0x1] ss:$0 sm:$0xff] }
   0x3   :  { %v2861_v6 = vld [vmem:[%s3324_s0] sm:$0xff]  ;;  %v2322_v8 = vcombine.low %v2847_v3, %v2856_v5  ;;  %v2903_v24 = vshrl.u32 %v30_v23, 7  ;;  %v2905_v25 = vand.u32 127, %v30_v23  ;;  %v2787_v30 = vmov -1e+09   ;;  %s2788_s13 = smov 56  }
   0x4   :  { %2463 = vmatpush3.bf16.msra.mxu0 %v2321_v4  ;;  %v65_v9 = vpack.c.bf16 %v2869_v7, %v2861_v6  ;;  %vm186_vm9 = vcmask 130048   ;;  %s2789_s14 = smov 64   ;;  %s2790_s15 = smov 112  }
   0x5   :  { %2464 = vmatprep.subr.bf16.mxu0 %v2782_v0  ;;  %v2908_v26 = vadd.s32 8, %v2903_v24  ;;  %v35_v27 = vshra.s32 %v2903_v24, 3  ;;  %v37_v28 = vshra.s32 %v2905_v25, 3  ;;  %vm40_vm4 = vcmp.ge.s32.totalorder %v2903_v24, %v2905_v25  ;;  %s2791_s16 = smov 104   ;;  %s2792_s17 = smov 80  }
   0x6   :  { %s2793_s18 = smov 72   ;;  %s2794_s19 = smov 32  }
   0x7   :  { %v36_v29 = vshra.s32 %v2908_v26, 3  ;;  %vm38_vm3 = vcmp.eq.s32.totalorder %v35_v27, %v37_v28  ;;  %vm41_vm6 = vcmp.ge.s32.totalorder %v2908_v26, %v2905_v25  ;;  %s2795_s20 = smov 48   ;;  %s2796_s21 = smov 40  }
   0x8   :  { %2465 = vmatpush3.bf16.msra.mxu0 %v2322_v8  ;;  %vm42_vm7 = vmand %vm38_vm3, %vm40_vm4 }
   0x9   :  { %2476 = vmatprep.subr.bf16.mxu0 %v2782_v0  ;;  %vm39_vm5 = vcmp.eq.s32.totalorder %v36_v29, %v37_v28  ;;  %v2922_v31 = vsel %vm42_vm7, 0.0, %v2787_v30 }
   0xa   :  { %vm43_vm8 = vmand %vm39_vm5, %vm41_vm6 }
   0xb   :  { %2467 = vmatmul.mubr.msk.bf16.vlgmr.msra.gmra.mrb[0].mxu0 %vm85_vm1, %v65_v9  ;;  %v2925_v33 = vsel %vm43_vm8, 0.0, %v2787_v30 }
   0xc   :  { %2478 = vmatprep.mubr.msk.bf16.mxu0 %vm2783_vm0, %v2782_v0 }
  0xde   :  { %v123_v11 = vpop.f32.mrb[0].mxu0 }
  0xdf   :  { %v2468_v12 = vpop.f32.mrb[1].mxu0  ;;  %v124_v14 = vadd.f32 %v2883_v10, %v123_v11 }
  0xe0   :  { %v126_v13 = vpop.f32.mrb[2].mxu0 }
  0xe1   :  { %v127_v15 = vadd.f32 %v2883_v10, %v126_v13  ;;  %v2469_v16 = vpop.f32.mrb[3].mxu0 }
  0xe3   :  { %v2887_v17 = vpack.c.bf16 %v127_v15, %v124_v14 }
  0xe5   :  { %257 = vrot.lane.b32.xlu1 %v2887_v17, %s2784_s10  ;;  %136 = vrot.lane.b32.xlu0 %v2887_v17, %s2785_s11 }
  0xe9   :  { %259 = vrot.lane.b32.xlu0 %v2887_v17, %s2786_s12 }
 0x157   :  { %v137_v18 = vpop.permute.xlu0 %136  ;;  %v258_v22 = vpop.permute.xlu1 %257 }
 0x158   :  { %v143_v19 = vsel %vm138_vm2, %v137_v18, 0 }
 0x159   :  { %2471 = vmatpush3.bf16.xpose.msra.mxu1 %v143_v19 }
 0x15a   :  { %2482 = vmatprep.subr.bf16.mxu1 %v2782_v0 }
 0x15b   :  { %v260_v20 = vpop.permute.xlu0 %259 }
 0x15c   :  { %v265_v21 = vsel %vm138_vm2, %v260_v20, 0 }
 0x160   :  { %2473 = vmatmul.mubr.msk.bf16.vlgmr.msra.gmra.mrb[0].mxu1 %vm138_vm2, %v2887_v17 }
 0x161   :  { %2483 = vmatpush3.bf16.xpose.msra.mxu1 %v265_v21  ;;  %2484 = vmatprep.mubr.msk.bf16.mxu1 %vm2783_vm0, %v2782_v0 }
 0x168   :  { %2485 = vmatmul.mubr.msk.bf16.vlgmr.msra.gmra.mrb[4].mxu1 %vm138_vm2, %v258_v22 }
 0x233   :  { %v179_v32 = vpop.f32.mrb[0].mxu1 }
 0x234   :  { %v180_v34 = vadd.f32 %v179_v32, %v2922_v31  ;;  %v2474_v35 = vpop.f32.mrb[1].mxu1 }
 0x235   :  { %v182_v36 = vpop.f32.mrb[2].mxu1 }
 0x236   :  { %v183_v37 = vadd.f32 %v182_v36, %v2925_v33  ;;  %v2475_v38 = vpop.f32.mrb[3].mxu1  ;;  %v187_v39 = vsel %vm186_vm9, %v180_v34, -inf }
 0x237   :  { %188 = vmax.xlane.f32.xlu1 %v187_v39 }
 0x238   :  { %v190_v40 = vsel %vm186_vm9, %v183_v37, -inf }
 0x239   :  { %191 = vmax.xlane.f32.xlu0 %v190_v40 }
 0x23b   :  { %v301_v41 = vpop.f32.mrb[4].mxu1 }
 0x23c   :  { %v302_v42 = vadd.f32 %v301_v41, %v2922_v31  ;;  %v2486_v43 = vpop.f32.mrb[5].mxu1 }
 0x23d   :  { %v304_v44 = vpop.f32.mrb[6].mxu1 }
 0x23e   :  { %v305_v45 = vadd.f32 %v304_v44, %v2925_v33  ;;  %v2487_v46 = vpop.f32.mrb[7].mxu1  ;;  %v308_v47 = vsel %vm186_vm9, %v302_v42, -inf }
 0x23f   :  { %309 = vmax.xlane.f32.xlu0 %v308_v47 }
 0x240   :  { %v311_v48 = vsel %vm186_vm9, %v305_v45, -inf }
 0x241   :  { %312 = vmax.xlane.f32.xlu1 %v311_v48 }
 0x2c4   :  { %v189_v49 = vpop.xlane.xlu1 %188 }
 0x2c5   :  { %v193_v50 = vsub.f32 %v180_v34, %v189_v49 }
 0x2c6   :  { %v192_v51 = vpop.xlane.xlu0 %191 }
 0x2c7   :  { %v195_v52 = vmul.f32 1.442695, %v193_v50  ;;  %v194_v53 = vsub.f32 %v183_v37, %v192_v51 }
 0x2c9   :  { %2706 = vpow2.f32 %v195_v52  ;;  %v197_v54 = vmul.f32 1.442695, %v194_v53 }
 0x2cb   :  { %2708 = vpow2.f32 %v197_v54 }
 0x2cc   :  { %v310_v55 = vpop.xlane.xlu0 %309 }
 0x2cd   :  { %v314_v56 = vsub.f32 %v302_v42, %v310_v55 }
 0x2ce   :  { %v313_v4 = vpop.xlane.xlu1 %312 }
 0x2cf   :  { %v316_v57 = vmul.f32 1.442695, %v314_v56  ;;  %v315_v8 = vsub.f32 %v305_v45, %v313_v4  ;;  %v131_v4 = vunpack.c.l.bf16 %v2837_v1  ;;  %v132_v1 = vunpack.c.l.bf16 %v2842_v2 }
 0x2d1   :  { %2710 = vpow2.f32 %v316_v57  ;;  %v318_v9 = vmul.f32 1.442695, %v315_v8 }
 0x2d3   :  { %v2707_v58 = vpop.eup %2706  ;;  %2712 = vpow2.f32 %v318_v9 }
 0x2d4   :  { %v199_v59 = vsel %vm186_vm9, %v2707_v58, 0.0 }
 0x2d5   :  { %v2709_v60 = vpop.eup %2708  ;;  %200 = vadd.xlane.f32.xlu0 %v199_v59 }
 0x2d6   :  { %v202_v61 = vsel %vm186_vm9, %v2709_v60, 0.0 }
 0x2d7   :  { %203 = vadd.xlane.f32.xlu1 %v202_v61 }
 0x2db   :  { %v2711_v62 = vpop.eup %2710 }
 0x2dc   :  { %v320_v63 = vsel %vm186_vm9, %v2711_v62, 0.0 }
 0x2dd   :  { %321 = vadd.xlane.f32.xlu0 %v320_v63  ;;  %v2713_v11 = vpop.eup %2712 }
 0x2de   :  { %v323_v12 = vsel %vm186_vm9, %v2713_v11, 0.0 }
 0x2e8   :  { %331 = vrot.lane.b32.xlu1 %v2887_v17, %s2788_s13 }
 0x2f3   :  { %210 = vrot.lane.b32.xlu0 %v2887_v17, %s2789_s14 }
 0x2f7   :  { %548 = vrot.lane.b32.xlu0 %v2887_v17, %s2790_s15 }
 0x2fb   :  { %756 = vrot.lane.b32.xlu0 %v2887_v17, %s2791_s16 }
 0x30c   :  { %324 = vadd.xlane.f32.xlu1 %v323_v12 }
 0x31d   :  { %550 = vrot.lane.b32.xlu1 %v2887_v17, %s2792_s17 }
 0x321   :  { %758 = vrot.lane.b32.xlu1 %v2887_v17, %s2793_s18 }
 0x362   :  { %v201_v13 = vpop.xlane.xlu0 %200 }
 0x363   :  { %2714 = vrcp.f32 %v201_v13 }
 0x364   :  { %v204_v14 = vpop.xlane.xlu1 %203 }
 0x365   :  { %2716 = vrcp.f32 %v204_v14 }
 0x368   :  { %v332_v23 = vpop.permute.xlu1 %331 }
 0x36a   :  { %v322_v15 = vpop.xlane.xlu0 %321 }
 0x36b   :  { %2718 = vrcp.f32 %v322_v15 }
 0x36d   :  { %v2715_v16 = vpop.eup %2714 }
 0x36e   :  { %v211_v18 = vpop.permute.xlu0 %210  ;;  %v207_v20 = vmul.f32 %v2715_v16, %v2707_v58 }
 0x36f   :  { %v2717_v19 = vpop.eup %2716  ;;  %2477 = vmatpush3.bf16.msra.mxu0 %v211_v18 }
 0x370   :  { %v208_v21 = vmul.f32 %v2717_v19, %v2709_v60  ;;  %2488 = vmatprep.subr.bf16.mxu0 %v2782_v0 }
 0x372   :  { %v209_v22 = vpack.c.bf16 %v208_v21, %v207_v20  ;;  %v549_v41 = vpop.permute.xlu0 %548 }
 0x374   :  { %2479 = vmatmul.mubr.msk.bf16.vlgmr.msra.gmra.mrb[4].mxu0 %vm186_vm9, %v209_v22 }
 0x375   :  { %2489 = vmatpush3.bf16.msra.mxu0 %v332_v23  ;;  %2490 = vmatprep.mubr.msk.bf16.mxu0 %vm2783_vm0, %v2782_v0  ;;  %v2719_v32 = vpop.eup %2718 }
 0x376   :  { %2504 = vmatprep.subr.bf16.mxu0 %v2782_v0  ;;  %v328_v35 = vmul.f32 %v2719_v32, %v2711_v62  ;;  %v757_v43 = vpop.permute.xlu0 %756 }
 0x399   :  { %v325_v28 = vpop.xlane.xlu1 %324 }
 0x39a   :  { %2720 = vrcp.f32 %v325_v28  ;;  %v133_v28 = vunpack.c.l.bf16 %v2847_v3 }
 0x39d   :  { %v551_v37 = vpop.permute.xlu1 %550 }
 0x39e   :  { %v556_v39 = vsel %vm138_vm2, %v551_v37, 0 }
 0x3a1   :  { %v759_v40 = vpop.permute.xlu1 %758 }
 0x3a2   :  { %v764_v42 = vsel %vm138_vm2, %v759_v40, 0 }
 0x3a4   :  { %v2721_v34 = vpop.eup %2720 }
 0x3a5   :  { %v329_v36 = vmul.f32 %v2721_v34, %v2713_v11 }
 0x3a7   :  { %v330_v38 = vpack.c.bf16 %v329_v36, %v328_v35 }
 0x3a9   :  { %2491 = vmatmul.mubr.msk.bf16.vlgmr.msra.gmra.mrb[8].mxu0 %vm186_vm9, %v330_v38 }
 0x3aa   :  { %2505 = vmatpush3.bf16.xpose.msra.mxu0 %v556_v39  ;;  %2506 = vmatprep.mubr.msk.bf16.mxu0 %vm2783_vm0, %v2782_v0 }
 0x3ab   :  { %2521 = vmatprep.subr.bf16.mxu0 %v2782_v0 }
 0x3b1   :  { %2507 = vmatmul.mubr.msk.bf16.vlgmr.msra.gmra.mrb[12].mxu0 %vm138_vm2, %v549_v41 }
 0x3b2   :  { %2522 = vmatpush3.bf16.xpose.msra.mxu0 %v764_v42  ;;  %2523 = vmatprep.mubr.msk.bf16.mxu0 %vm2783_vm0, %v2782_v0 }
 0x3b3   :  { %2538 = vmatprep.subr.bf16.mxu0 %v2782_v0 }
 0x3b9   :  { %2524 = vmatmul.mubr.msk.bf16.vlgmr.msra.gmra.mrb[16].mxu0 %vm138_vm2, %v757_v43 }
 0x3ba   :  { %2542 = vmatprep.mubr.msk.bf16.mxu0 %vm2783_vm0, %v2782_v0 }
 0x447   :  { %v2968_v44 = vpop.f32.mrb[4].mxu0 }
 0x448   :  { %v2480_v45 = vpop.f32.mrb[5].mxu0 }
 0x449   :  { %v2970_v46 = vpop.f32.mrb[6].mxu0 }
 0x44a   :  { %v2481_v47 = vpop.f32.mrb[7].mxu0 }
 0x47c   :  { %v371_v48 = vpop.f32.mrb[8].mxu0 }
 0x47d   :  { %v2492_v49 = vpop.f32.mrb[9].mxu0  ;;  %2496 = vmatprep.mubr.msk.f32.mxu1 %vm138_vm2, %v371_v48 }
 0x47e   :  { %v374_v50 = vpop.f32.mrb[10].mxu0 }
 0x47f   :  { %v2493_v51 = vpop.f32.mrb[11].mxu0 }
 0x484   :  { %v592_v52 = vpop.f32.mrb[12].mxu0 }
 0x485   :  { %v593_v53 = vadd.f32 %v592_v52, %v2922_v31  ;;  %v2508_v54 = vpop.f32.mrb[13].mxu0 }
 0x486   :  { %v595_v55 = vpop.f32.mrb[14].mxu0 }
 0x487   :  { %v596_v56 = vadd.f32 %v595_v55, %v2925_v33  ;;  %v2509_v57 = vpop.f32.mrb[15].mxu0  ;;  %v599_v58 = vsel %vm186_vm9, %v593_v53, -inf }
 0x488   :  { %600 = vmax.xlane.f32.xlu1 %v599_v58 }
 0x489   :  { %v602_v59 = vsel %vm186_vm9, %v596_v56, -inf }
 0x48a   :  { %603 = vmax.xlane.f32.xlu0 %v602_v59 }
 0x48c   :  { %v800_v60 = vpop.f32.mrb[16].mxu0 }
 0x48d   :  { %v2525_v61 = vpop.f32.mrb[17].mxu0  ;;  %v801_v20 = vadd.f32 %v800_v60, %v2922_v31 }
 0x48e   :  { %v803_v62 = vpop.f32.mrb[18].mxu0 }
 0x48f   :  { %v2526_v63 = vpop.f32.mrb[19].mxu0  ;;  %v804_v21 = vadd.f32 %v803_v62, %v2925_v33  ;;  %v807_v22 = vsel %vm186_vm9, %v801_v20, -inf }
 0x491   :  { %v810_v23 = vsel %vm186_vm9, %v804_v21, -inf }
 0x499   :  { %464 = vrot.lane.b32.xlu1 %v131_v4, %s2794_s19 }
 0x515   :  { %v601_v8 = vpop.xlane.xlu1 %600 }
 0x516   :  { %v605_v9 = vsub.f32 %v593_v53, %v601_v8 }
 0x517   :  { %v604_v11 = vpop.xlane.xlu0 %603 }
 0x518   :  { %v607_v12 = vmul.f32 1.442695, %v605_v9  ;;  %v606_v13 = vsub.f32 %v596_v56, %v604_v11 }
 0x519   :  { %v465_v2 = vpop.permute.xlu1 %464 }
 0x51a   :  { %2722 = vpow2.f32 %v607_v12  ;;  %v609_v14 = vmul.f32 1.442695, %v606_v13 }
 0x51c   :  { %2724 = vpow2.f32 %v609_v14 }
 0x524   :  { %v2723_v15 = vpop.eup %2722 }
 0x525   :  { %v611_v16 = vsel %vm186_vm9, %v2723_v15, 0.0 }
 0x526   :  { %v2725_v18 = vpop.eup %2724  ;;  %612 = vadd.xlane.f32.xlu0 %v611_v16 }
 0x527   :  { %v614_v19 = vsel %vm186_vm9, %v2725_v18, 0.0 }
 0x528   :  { %615 = vadd.xlane.f32.xlu1 %v614_v19  ;;  %v3024_v19 = vld [vmem:[%s3325_s5 + $0x3] ss:$0 sm:$0xff] }
 0x539   :  { %622 = vrot.lane.b32.xlu1 %v2887_v17, %s2795_s20 }
 0x53c   :  { %379 = vrot.lane.b32.xlu0 %v132_v1, %s2794_s19  ;;  %v3029_v1 = vld [vmem:[%s3323_s3 + $0x8] sm:$0xf] }
 0x55b   :  { %808 = vmax.xlane.f32.xlu0 %v807_v22 }
 0x55d   :  { %811 = vmax.xlane.f32.xlu1 %v810_v23 }
 0x56e   :  { %670 = vrot.lane.b32.xlu1 %v133_v28, %s2794_s19 }
 0x5b3   :  { %v613_v32 = vpop.xlane.xlu0 %612 }
 0x5b4   :  { %2726 = vrcp.f32 %v613_v32 }
 0x5b5   :  { %v616_v34 = vpop.xlane.xlu1 %615 }
 0x5b6   :  { %2728 = vrcp.f32 %v616_v34 }
 0x5b7   :  { %v380_v35 = vpop.permute.xlu0 %379 }
 0x5b8   :  { %2494 = vmatprep.subr.mxu1 %v380_v35 }
 0x5b9   :  { %2495 = vmatpush3.msra.mxu1 %v380_v35  ;;  %v623_v37 = vpop.permute.xlu1 %622 }
 0x5ba   :  { %2497 = vmatmul.mubr.msk.f32.vlgmr.msra.gmra.mrb[8].mxu1 %vm138_vm2, %v374_v50  ;;  %2499 = vmatprep.subr.mxu1 %v465_v2  ;;  %v134_v50 = vunpack.c.l.bf16 %v2856_v5 }
 0x5bb   :  { %2500 = vmatpush3.msra.mxu1 %v465_v2  ;;  %2501 = vmatprep.mubr.msk.f32.mxu1 %vm138_vm2, %v2968_v44 }
 0x5bc   :  { %2510 = vmatprep.subr.bf16.mxu1 %v2782_v0  ;;  %878 = vrot.lane.b32.xlu1 %v134_v50, %s2794_s19 }
 0x5be   :  { %v2727_v3 = vpop.eup %2726 }
 0x5bf   :  { %v619_v33 = vmul.f32 %v2727_v3, %v2723_v15 }
 0x5c0   :  { %v2729_v31 = vpop.eup %2728  ;;  %964 = vrot.lane.b32.xlu1 %v2883_v10, %s2794_s19 }
 0x5c1   :  { %v620_v36 = vmul.f32 %v2729_v31, %v2725_v18 }
 0x5c2   :  { %2502 = vmatmul.mubr.msk.f32.vlgmr.msra.gmra.mrb[8].mxu1 %vm138_vm2, %v2970_v46 }
 0x5c3   :  { %2511 = vmatpush3.bf16.msra.mxu1 %v623_v37  ;;  %2512 = vmatprep.mubr.msk.bf16.mxu1 %vm2783_vm0, %v2782_v0  ;;  %v621_v38 = vpack.c.bf16 %v620_v36, %v619_v33 }
 0x5c6   :  { %2513 = vmatmul.mubr.msk.bf16.vlgmr.msra.gmra.mrb[12].mxu1 %vm186_vm9, %v621_v38 }
 0x5e8   :  { %v809_v39 = vpop.xlane.xlu0 %808 }
 0x5e9   :  { %v813_v40 = vsub.f32 %v801_v20, %v809_v39  ;;  %v3044_v20 = vld [vmem:[%s3323_s3 + $0x28] sm:$0xf] }
 0x5ea   :  { %v812_v41 = vpop.xlane.xlu1 %811 }
 0x5eb   :  { %v815_v42 = vmul.f32 1.442695, %v813_v40  ;;  %v814_v43 = vsub.f32 %v804_v21, %v812_v41  ;;  %v3049_v21 = vld [vmem:[%s3323_s3 + $0x38] sm:$0xf] }
 0x5ec   :  { %v2342_v22 = vcombine.low %v3044_v20, %v3049_v21 }
 0x5ed   :  { %2730 = vpow2.f32 %v815_v42  ;;  %v817_v44 = vmul.f32 1.442695, %v814_v43 }
 0x5ee   :  { %v671_v49 = vpop.permute.xlu1 %670 }
 0x5ef   :  { %2732 = vpow2.f32 %v817_v44  ;;  %2516 = vmatprep.subr.mxu1 %v671_v49 }
 0x5f0   :  { %2517 = vmatpush3.msra.mxu1 %v671_v49 }
 0x5f1   :  { %2527 = vmatprep.subr.bf16.mxu1 %v2782_v0 }
 0x5f7   :  { %v2731_v45 = vpop.eup %2730 }
 0x5f8   :  { %v819_v47 = vsel %vm186_vm9, %v2731_v45, 0.0 }
 0x5f9   :  { %v2733_v48 = vpop.eup %2732  ;;  %820 = vadd.xlane.f32.xlu0 %v819_v47 }
 0x5fa   :  { %v822_v46 = vsel %vm186_vm9, %v2733_v48, 0.0 }
 0x5fd   :  { %823 = vadd.xlane.f32.xlu0 %v822_v46 }
 0x613   :  { %830 = vrot.lane.b32.xlu0 %v2887_v17, %s2796_s21 }
 0x62e   :  { %v879_v58 = vpop.permute.xlu1 %878 }
 0x632   :  { %v965_v8 = vpop.permute.xlu1 %964 }
 0x686   :  { %v821_v51 = vpop.xlane.xlu0 %820 }
 0x68a   :  { %v824_v52 = vpop.xlane.xlu0 %823 }
 0x68b   :  { %2734 = vrcp.f32 %v824_v52  ;;  %v27_v52 = vld [vmem:[%s3326_s1 + $0x8] sm:$0xff] }
 0x68c   :  { %2736 = vrcp.f32 %v821_v51  ;;  %v26_v51 = vld [vmem:[%s3326_s1] sm:$0xff] }
 0x68e   :  { %v831_v5 = vpop.permute.xlu0 %830 }
 0x695   :  { %v2735_v53 = vpop.eup %2734 }
 0x696   :  { %v2737_v54 = vpop.eup %2736  ;;  %v828_v17 = vmul.f32 %v2735_v53, %v2733_v48 }
 0x697   :  { %v827_v59 = vmul.f32 %v2737_v54, %v2731_v45 }
 0x699   :  { %v662_v55 = vpop.f32.mrb[12].mxu1  ;;  %v829_v10 = vpack.c.bf16 %v828_v17, %v827_v59 }
 0x69a   :  { %v2514_v56 = vpop.f32.mrb[13].mxu1  ;;  %2518 = vmatprep.mubr.msk.f32.mxu1 %vm138_vm2, %v662_v55  ;;  %v1077_v55 = vpack.c.bf16 %v27_v52, %v26_v51 }
 0x69b   :  { %v665_v57 = vpop.f32.mrb[14].mxu1 }
 0x69c   :  { %v2515_v60 = vpop.f32.mrb[15].mxu1  ;;  %2519 = vmatmul.mubr.msk.f32.vlgmr.msra.gmra.mrb[8].mxu1 %vm138_vm2, %v665_v57  ;;  %v28_v57 = vld [vmem:[%s3326_s1 + $0x10] sm:$0xff] }
 0x69d   :  { %2528 = vmatpush3.bf16.msra.mxu1 %v831_v5  ;;  %2529 = vmatprep.mubr.msk.bf16.mxu1 %vm2783_vm0, %v2782_v0 }
 0x69e   :  { %2533 = vmatprep.subr.mxu1 %v879_v58 }
 0x6a0   :  { %2530 = vmatmul.mubr.msk.bf16.vlgmr.msra.gmra.mrb[16].mxu1 %vm186_vm9, %v829_v10 }
 0x6a1   :  { %2534 = vmatpush3.msra.mxu1 %v879_v58  ;;  %v29_v58 = vld [vmem:[%s3326_s1 + $0x18] sm:$0xff] }
 0x6a2   :  { %2554 = vmatprep.subr.bf16.mxu1 %v2782_v0  ;;  %v1078_v59 = vpack.c.bf16 %v29_v58, %v28_v57 }
 0x773   :  { %v870_v61 = vpop.f32.mrb[16].mxu1 }
 0x774   :  { %v2531_v62 = vpop.f32.mrb[17].mxu1  ;;  %2535 = vmatprep.mubr.msk.f32.mxu1 %vm138_vm2, %v870_v61 }
 0x775   :  { %v873_v63 = vpop.f32.mrb[18].mxu1 }
 0x776   :  { %v2532_v4 = vpop.f32.mrb[19].mxu1  ;;  %2536 = vmatmul.mubr.msk.f32.vlgmr.msra.gmra.mrb[8].mxu1 %vm138_vm2, %v873_v63 }
 0x777   :  { %2558 = vmatprep.mubr.msk.bf16.mxu1 %vm2783_vm0, %v2782_v0 }
 0x849   :  { %v2537_v9 = vpop.f32.mrb[8].mxu1 }
 0x84a   :  { %v968_v11 = vadd.f32 %v2537_v9, %v965_v8  ;;  %v953_v12 = vpop.f32.mrb[9].mxu1 }
 0x84b   :  { %v967_v13 = vadd.f32 %v965_v8, %v953_v12 }
 0x84c   :  { %v970_v14 = vadd.f32 %v968_v11, %v2869_v7  ;;  %v3090_v11 = vld [vmem:[%s3325_s5 + $0x2] ss:$0 sm:$0xff] }
 0x84d   :  { %v969_v15 = vadd.f32 %v967_v13, %v2861_v6  ;;  %v3034_v6 = vld [vmem:[%s3323_s3 + $0x18] sm:$0xf] }
 0x84e   :  { %v975_v16 = vsel %vm85_vm1, %v970_v14, 0.0  ;;  %v2341_v7 = vcombine.low %v3029_v1, %v3034_v6 }
 0x84f   :  { %976 = vadd.xlane.f32.xlu1 %v975_v16  ;;  %v972_v18 = vsel %vm85_vm1, %v969_v15, 0.0 }
 0x850   :  { %973 = vadd.xlane.f32.xlu0 %v972_v18  ;;  %2539 = vmatpush3.bf16.msra.mxu0 %v2341_v7 }
 0x851   :  { %2540 = vmatprep.subr.bf16.mxu0 %v2782_v0 }
 0x854   :  { %2541 = vmatpush3.bf16.msra.mxu0 %v2342_v22 }
 0x860   :  { %1007 = vrot.lane.b32.xlu1 %v3024_v19, %s2785_s11 }
 0x864   :  { %1088 = vrot.lane.b32.xlu1 %v2342_v22, %s2785_s11 }
 0x868   :  { %1029 = vrot.lane.b32.xlu1 %v3024_v19, %s2789_s14 }
 0x8dc   :  { %v977_v23 = vpop.xlane.xlu1 %976 }
 0x8dd   :  { %v980_v28 = vmul.f32 0.03125, %v977_v23  ;;  %v974_v2 = vpop.xlane.xlu0 %973 }
 0x8de   :  { %v979_v32 = vmul.f32 0.03125, %v974_v2 }
 0x8df   :  { %v982_v34 = vsub.f32 %v970_v14, %v980_v28 }
 0x8e0   :  { %v981_v35 = vsub.f32 %v969_v15, %v979_v32  ;;  %v1008_v49 = vpop.permute.xlu1 %1007  ;;  %v49_v32 = vld [vmem:[%s3327_s2] sm:$0x1] }
 0x8e1   :  { %v984_v33 = vmul.f32 %v982_v34, %v982_v34  ;;  %vm50_vm10 = vcmp.gt.f32.partialorder %v49_v32, 0.5 }
 0x8e2   :  { %v983_v3 = vmul.f32 %v981_v35, %v981_v35 }
 0x8e3   :  { %v988_v36 = vsel %vm85_vm1, %v984_v33, 0.0 }
 0x8e4   :  { %v985_v31 = vsel %vm85_vm1, %v983_v3, 0.0  ;;  %v1089_v56 = vpop.permute.xlu1 %1088 }
 0x8e5   :  { %986 = vadd.xlane.f32.xlu0 %v985_v31  ;;  %v46_v31 = vshra.s32 %v2905_v25, 4 }
 0x8e7   :  { %vm47_vm11 = vcmp.eq.s32.totalorder %v35_v27, %v46_v31  ;;  %vm48_vm13 = vcmp.eq.s32.totalorder %v36_v29, %v46_v31 }
 0x8e8   :  { %v1030_v5 = vpop.permute.xlu1 %1029 }
 0x8e9   :  { %989 = vadd.xlane.f32.xlu0 %v988_v36 }
 0x8ff   :  { %1086 = vrot.lane.b32.xlu0 %v2341_v7, %s2785_s11 }
 0x972   :  { %v987_v37 = vpop.xlane.xlu0 %986 }
 0x973   :  { %v991_v38 = vmul.f32 0.03125, %v987_v37 }
 0x975   :  { %v993_v39 = vadd.f32 1e-05, %v991_v38 }
 0x976   :  { %v990_v40 = vpop.xlane.xlu0 %989 }
 0x977   :  { %2738 = vrsqrt.f32 %v993_v39  ;;  %v992_v41 = vmul.f32 0.03125, %v990_v40 }
 0x979   :  { %v994_v42 = vadd.f32 1e-05, %v992_v41 }
 0x97a   :  { %v1087_v43 = vpop.permute.xlu0 %1086 }
 0x97b   :  { %2740 = vrsqrt.f32 %v994_v42  ;;  %2546 = vmatprep.subr.bf16.mxu0 %v1087_v43 }
 0x981   :  { %v2739_v44 = vpop.eup %2738 }
 0x982   :  { %v997_v45 = vmul.f32 %v2739_v44, %v981_v35  ;;  %v2797_v35 = vmov 0  }
 0x983   :  { %v51_v3 = vsel %vm50_vm10, 1, %v2797_v35 }
 0x984   :  { %v1005_v46 = vmul.f32 %v3024_v19, %v997_v45 }
 0x985   :  { %v2741_v47 = vpop.eup %2740 }
 0x986   :  { %v998_v48 = vmul.f32 %v2741_v47, %v982_v34  ;;  %v3067_v53 = vadd.f32 %v1008_v49, %v1005_v46  ;;  %v54_v34 = vsub.s32 0, %v2903_v24 }
 0x988   :  { %v1006_v50 = vmul.f32 %v3024_v19, %v998_v48  ;;  %v55_v33 = vrot.slane %v51_v3, %v54_v34 }
 0x98a   :  { %v3069_v54 = vadd.f32 %v1008_v49, %v1006_v50  ;;  %vm56_vm12 = vcmp.eq.s32.totalorder %v55_v33, 1 }
 0x98b   :  { %vm57_vm14 = vmand %vm47_vm11, %vm56_vm12 }
 0x98c   :  { %v1016_v17 = vpack.c.bf16 %v3069_v54, %v3067_v53  ;;  %vm58_vm15 = vmand %vm48_vm13, %vm56_vm12  ;;  %v3120_v36 = vsel %vm57_vm14, 0.0, %v2787_v30 }
 0x98d   :  { %v3123_v38 = vsel %vm58_vm15, 0.0, %v2787_v30 }
 0x98e   :  { %2543 = vmatmul.mubr.msk.bf16.vlgmr.msra.gmra.mrb[20].mxu0 %vm85_vm1, %v1016_v17 }
 0x98f   :  { %2547 = vmatpush3.bf16.msra.mxu0 %v1087_v43  ;;  %2550 = vmatprep.mubr.msk.bf16.mxu0 %vm85_vm1, %v1077_v55 }
 0x990   :  { %2548 = vmatprep.subr.bf16.mxu0 %v1089_v56 }
 0x993   :  { %2549 = vmatpush3.bf16.msra.mxu0 %v1089_v56 }
 0x994   :  { %2562 = vmatprep.subr.bf16.mxu0 %v2782_v0 }
 0x996   :  { %2551 = vmatmul.mubr.msk.bf16.vlgmr.msra.gmra.mrb[24].mxu0 %vm85_vm1, %v1078_v59 }
 0x997   :  { %2566 = vmatprep.mubr.msk.bf16.mxu0 %vm2783_vm0, %v2782_v0 }
 0xa61   :  { %v1069_v60 = vpop.f32.mrb[20].mxu0 }
 0xa62   :  { %v2544_v10 = vpop.f32.mrb[21].mxu0  ;;  %v1070_v62 = vadd.f32 %v1069_v60, %v1030_v5 }
 0xa63   :  { %v1072_v61 = vpop.f32.mrb[22].mxu0 }
 0xa64   :  { %v1073_v63 = vadd.f32 %v1072_v61, %v1030_v5  ;;  %v2545_v4 = vpop.f32.mrb[23].mxu0 }
 0xa66   :  { %v3085_v8 = vpack.c.bf16 %v1073_v63, %v1070_v62 }
 0xa69   :  { %v2552_v9 = vpop.f32.mrb[24].mxu0 }
 0xa6a   :  { %v1132_v12 = vpop.f32.mrb[25].mxu0  ;;  %v1141_v14 = vadd.f32 %v2552_v9, %v3090_v11 }
 0xa6b   :  { %v2553_v13 = vpop.f32.mrb[26].mxu0  ;;  %v1133_v18 = vadd.f32 %v3090_v11, %v1132_v12 }
 0xa6c   :  { %v1144_v15 = vadd.f32 %v2553_v13, %v3090_v11  ;;  %v1135_v16 = vpop.f32.mrb[27].mxu0 }
 0xa6d   :  { %v1136_v7 = vadd.f32 %v3090_v11, %v1135_v16 }
 0xa6e   :  { %v3096_v22 = vpack.c.bf16 %v1144_v15, %v1141_v14 }
 0xa6f   :  { %v3098_v23 = vpack.c.bf16 %v1136_v7, %v1133_v18 }
 0xa70   :  { %v1160_v2 = vsel %vm138_vm2, %v3096_v22, 0 }
 0xa71   :  { %v1157_v28 = vsel %vm138_vm2, %v3098_v23, 0 }
 0xa72   :  { %2555 = vmatpush3.bf16.xpose.msra.mxu1 %v1157_v28 }
 0xa73   :  { %2556 = vmatprep.subr.bf16.mxu1 %v2782_v0 }
 0xa7a   :  { %2557 = vmatpush3.bf16.xpose.msra.mxu1 %v1160_v2 }
 0xa7b   :  { %2578 = vmatprep.subr.bf16.mxu1 %v2782_v0 }
 0xa81   :  { %2559 = vmatmul.mubr.msk.bf16.vlgmr.msra.gmra.mrb[20].mxu1 %vm138_vm2, %v3085_v8 }
 0xa82   :  { %2582 = vmatprep.mubr.msk.bf16.mxu1 %vm2783_vm0, %v2782_v0 }
 0xb54   :  { %v1196_v37 = vpop.f32.mrb[20].mxu1 }
 0xb55   :  { %v1197_v39 = vadd.f32 %v1196_v37, %v3120_v36  ;;  %v2560_v25 = vpop.f32.mrb[21].mxu1 }
 0xb56   :  { %v1199_v40 = vpop.f32.mrb[22].mxu1 }
 0xb57   :  { %v1200_v24 = vadd.f32 %v1199_v40, %v3123_v38  ;;  %v2561_v27 = vpop.f32.mrb[23].mxu1  ;;  %v1203_v41 = vsel %vm85_vm1, %v1197_v39, -inf }
 0xb58   :  { %1204 = vmax.xlane.f32.xlu0 %v1203_v41 }
 0xb59   :  { %v1206_v26 = vsel %vm85_vm1, %v1200_v24, -inf }
 0xb5a   :  { %1207 = vmax.xlane.f32.xlu1 %v1206_v26 }
 0xb6b   :  { %1228 = vrot.lane.b32.xlu1 %v3098_v23, %s2785_s11 }
 0xb6f   :  { %1281 = vrot.lane.b32.xlu1 %v3098_v23, %s2784_s10 }
 0xb73   :  { %1283 = vrot.lane.b32.xlu1 %v3096_v22, %s2784_s10 }
 0xb77   :  { %1580 = vrot.lane.b32.xlu1 %v3098_v23, %s2790_s15 }
 0xb7b   :  { %1578 = vrot.lane.b32.xlu1 %v3085_v8, %s2790_s15 }
 0xbe5   :  { %v1205_v29 = vpop.xlane.xlu0 %1204 }
 0xbe6   :  { %v1209_v30 = vsub.f32 %v1197_v39, %v1205_v29 }
 0xbe7   :  { %v1208_v42 = vpop.xlane.xlu1 %1207 }
 0xbe8   :  { %v1211_v43 = vmul.f32 1.442695, %v1209_v30  ;;  %v1210_v44 = vsub.f32 %v1200_v24, %v1208_v42 }
 0xbea   :  { %2742 = vpow2.f32 %v1211_v43  ;;  %v1213_v45 = vmul.f32 1.442695, %v1210_v44 }
 0xbeb   :  { %v1229_v47 = vpop.permute.xlu1 %1228 }
 0xbec   :  { %2744 = vpow2.f32 %v1213_v45  ;;  %2563 = vmatpush3.bf16.msra.mxu0 %v1229_v47 }
 0xbed   :  { %2564 = vmatprep.subr.bf16.mxu0 %v2782_v0 }
 0xbef   :  { %v1282_v59 = vpop.permute.xlu1 %1281 }
 0xbf0   :  { %v1289_v60 = vsel %vm138_vm2, %v1282_v59, 0 }
 0xbf3   :  { %v1284_v10 = vpop.permute.xlu1 %1283 }
 0xbf4   :  { %v2743_v48 = vpop.eup %2742  ;;  %v1292_v61 = vsel %vm138_vm2, %v1284_v10, 0 }
 0xbf5   :  { %v1215_v46 = vsel %vm85_vm1, %v2743_v48, 0.0 }
 0xbf6   :  { %v2745_v49 = vpop.eup %2744  ;;  %1216 = vadd.xlane.f32.xlu0 %v1215_v46 }
 0xbf7   :  { %v1218_v50 = vsel %vm85_vm1, %v2745_v49, 0.0  ;;  %v1581_v62 = vpop.permute.xlu1 %1580 }
 0xbf8   :  { %v1588_v4 = vsel %vm138_vm2, %v1581_v62, 0 }
 0xbfa   :  { %1219 = vadd.xlane.f32.xlu0 %v1218_v50 }
 0xbfb   :  { %v1579_v13 = vpop.permute.xlu1 %1578 }
 0xc10   :  { %1230 = vrot.lane.b32.xlu0 %v3096_v22, %s2785_s11 }
 0xc14   :  { %1279 = vrot.lane.b32.xlu0 %v3085_v8, %s2784_s10 }
 0xc18   :  { %1582 = vrot.lane.b32.xlu0 %v3096_v22, %s2790_s15 }
 0xc83   :  { %v1217_v51 = vpop.xlane.xlu0 %1216 }
 0xc84   :  { %2746 = vrcp.f32 %v1217_v51 }
 0xc87   :  { %v1220_v52 = vpop.xlane.xlu0 %1219 }
 0xc88   :  { %2748 = vrcp.f32 %v1220_v52  ;;  %v1149_v52 = vunpack.c.l.bf16 %v3029_v1 }
 0xc8b   :  { %v1231_v55 = vpop.permute.xlu0 %1230 }
 0xc8c   :  { %2565 = vmatpush3.bf16.msra.mxu0 %v1231_v55 }
 0xc8d   :  { %2570 = vmatprep.subr.bf16.mxu0 %v2782_v0 }
 0xc8e   :  { %v2747_v17 = vpop.eup %2746 }
 0xc8f   :  { %v1223_v57 = vmul.f32 %v2747_v17, %v2743_v48  ;;  %v1280_v63 = vpop.permute.xlu0 %1279 }
 0xc92   :  { %v2749_v56 = vpop.eup %2748 }
 0xc93   :  { %v1224_v58 = vmul.f32 %v2749_v56, %v2745_v49  ;;  %v1583_v9 = vpop.permute.xlu0 %1582  ;;  %v1150_v56 = vunpack.c.l.bf16 %v3034_v6 }
 0xc94   :  { %v1591_v12 = vsel %vm138_vm2, %v1583_v9, 0 }
 0xc95   :  { %v1225_v5 = vpack.c.bf16 %v1224_v58, %v1223_v57 }
 0xc97   :  { %2567 = vmatmul.mubr.msk.bf16.vlgmr.msra.gmra.mrb[28].mxu0 %vm85_vm1, %v1225_v5 }
 0xc98   :  { %2571 = vmatpush3.bf16.xpose.msra.mxu0 %v1289_v60  ;;  %2574 = vmatprep.mubr.msk.bf16.mxu0 %vm2783_vm0, %v2782_v0 }
 0xc99   :  { %2572 = vmatprep.subr.bf16.mxu0 %v2782_v0 }
 0xca0   :  { %2573 = vmatpush3.bf16.xpose.msra.mxu0 %v1292_v61 }
 0xca1   :  { %2596 = vmatprep.subr.bf16.mxu0 %v2782_v0 }
 0xca7   :  { %2575 = vmatmul.mubr.msk.bf16.vlgmr.msra.gmra.mrb[32].mxu0 %vm138_vm2, %v1280_v63 }
 0xca8   :  { %2597 = vmatpush3.bf16.xpose.msra.mxu0 %v1588_v4  ;;  %2600 = vmatprep.mubr.msk.bf16.mxu0 %vm2783_vm0, %v2782_v0 }
 0xca9   :  { %2598 = vmatprep.subr.bf16.mxu0 %v2782_v0 }
 0xcb0   :  { %2599 = vmatpush3.bf16.xpose.msra.mxu0 %v1591_v12 }
 0xcb1   :  { %2617 = vmatprep.subr.bf16.mxu0 %v2782_v0 }
 0xcb7   :  { %2601 = vmatmul.mubr.msk.bf16.vlgmr.msra.gmra.mrb[36].mxu0 %vm138_vm2, %v1579_v13 }
 0xcb8   :  { %2621 = vmatprep.mubr.msk.bf16.mxu0 %vm2783_vm0, %v2782_v0 }
 0xd6a   :  { %v3166_v14 = vpop.f32.mrb[28].mxu0 }
 0xd6b   :  { %v2568_v15 = vpop.f32.mrb[29].mxu0 }
 0xd6c   :  { %v3168_v16 = vpop.f32.mrb[30].mxu0 }
 0xd6d   :  { %v2569_v18 = vpop.f32.mrb[31].mxu0 }
 0xd7a   :  { %v1328_v7 = vpop.f32.mrb[32].mxu0 }
 0xd7b   :  { %v1329_v28 = vadd.f32 %v1328_v7, %v3120_v36  ;;  %v2576_v2 = vpop.f32.mrb[33].mxu0 }
 0xd7c   :  { %v1331_v32 = vpop.f32.mrb[34].mxu0 }
 0xd7d   :  { %v1332_v34 = vadd.f32 %v1331_v32, %v3123_v38  ;;  %v2577_v35 = vpop.f32.mrb[35].mxu0  ;;  %v1335_v3 = vsel %vm85_vm1, %v1329_v28, -inf }
 0xd7e   :  { %1336 = vmax.xlane.f32.xlu0 %v1335_v3 }
 0xd7f   :  { %v1338_v31 = vsel %vm85_vm1, %v1332_v34, -inf }
 0xd80   :  { %1339 = vmax.xlane.f32.xlu1 %v1338_v31 }
 0xd8a   :  { %v1627_v33 = vpop.f32.mrb[36].mxu0 }
 0xd8b   :  { %v2602_v37 = vpop.f32.mrb[37].mxu0  ;;  %v1628_v40 = vadd.f32 %v1627_v33, %v3120_v36 }
 0xd8c   :  { %v1630_v39 = vpop.f32.mrb[38].mxu0 }
 0xd8d   :  { %v2603_v25 = vpop.f32.mrb[39].mxu0  ;;  %v1634_v24 = vsel %vm85_vm1, %v1628_v40, -inf  ;;  %v1631_v55 = vadd.f32 %v1630_v39, %v3123_v38 }
 0xd8f   :  { %v1637_v17 = vsel %vm85_vm1, %v1631_v55, -inf }
 0xd91   :  { %1358 = vrot.lane.b32.xlu1 %v3098_v23, %s2786_s12 }
 0xd95   :  { %1796 = vrot.lane.b32.xlu1 %v3098_v23, %s2791_s16 }
 0xd99   :  { %1798 = vrot.lane.b32.xlu1 %v3096_v22, %s2791_s16 }
 0xdbd   :  { %1635 = vmax.xlane.f32.xlu1 %v1634_v24 }
 0xdce   :  { %1494 = vrot.lane.b32.xlu1 %v1149_v52, %s2794_s19  ;;  %v1151_v52 = vunpack.c.l.bf16 %v3044_v20 }
 0xe0b   :  { %v1337_v27 = vpop.xlane.xlu0 %1336 }
 0xe0c   :  { %v1341_v41 = vsub.f32 %v1329_v28, %v1337_v27 }
 0xe0d   :  { %v1340_v26 = vpop.xlane.xlu1 %1339 }
 0xe0e   :  { %v1343_v29 = vmul.f32 1.442695, %v1341_v41  ;;  %v1342_v30 = vsub.f32 %v1332_v34, %v1340_v26 }
 0xe10   :  { %2750 = vpow2.f32 %v1343_v29  ;;  %v1345_v42 = vmul.f32 1.442695, %v1342_v30 }
 0xe11   :  { %v1359_v43 = vpop.permute.xlu1 %1358 }
 0xe12   :  { %2752 = vpow2.f32 %v1345_v42  ;;  %2579 = vmatpush3.bf16.msra.mxu1 %v1359_v43 }
 0xe13   :  { %2580 = vmatprep.subr.bf16.mxu1 %v2782_v0 }
 0xe15   :  { %v1797_v44 = vpop.permute.xlu1 %1796 }
 0xe16   :  { %v1804_v45 = vsel %vm138_vm2, %v1797_v44, 0 }
 0xe17   :  { %2618 = vmatpush3.bf16.xpose.msra.mxu0 %v1804_v45 }
 0xe18   :  { %2619 = vmatprep.subr.bf16.mxu0 %v2782_v0 }
 0xe19   :  { %v1799_v48 = vpop.permute.xlu1 %1798 }
 0xe1a   :  { %v2751_v47 = vpop.eup %2750  ;;  %v1807_v50 = vsel %vm138_vm2, %v1799_v48, 0 }
 0xe1b   :  { %v1347_v46 = vsel %vm85_vm1, %v2751_v47, 0.0 }
 0xe1c   :  { %v2753_v49 = vpop.eup %2752  ;;  %1348 = vadd.xlane.f32.xlu0 %v1347_v46 }
 0xe1d   :  { %v1350_v51 = vsel %vm85_vm1, %v2753_v49, 0.0 }
 0xe1f   :  { %2620 = vmatpush3.bf16.xpose.msra.mxu0 %v1807_v50 }
 0xe20   :  { %1351 = vadd.xlane.f32.xlu0 %v1350_v51  ;;  %2638 = vmatprep.subr.bf16.mxu0 %v2782_v0 }
 0xe36   :  { %1360 = vrot.lane.b32.xlu0 %v3096_v22, %s2786_s12 }
 0xe3a   :  { %1794 = vrot.lane.b32.xlu0 %v3085_v8, %s2791_s16 }
 0xe4a   :  { %v1636_v57 = vpop.xlane.xlu1 %1635 }
 0xe4b   :  { %v1640_v58 = vsub.f32 %v1628_v40, %v1636_v57 }
 0xe4d   :  { %v1642_v59 = vmul.f32 1.442695, %v1640_v58 }
 0xe4e   :  { %v1495_v7 = vpop.permute.xlu1 %1494 }
 0xe4f   :  { %2754 = vpow2.f32 %v1642_v59 }
 0xe59   :  { %1638 = vmax.xlane.f32.xlu0 %v1637_v17  ;;  %v3199_v5 = vpop.eup %2754 }
 0xe5a   :  { %v1646_v1 = vsel %vm85_vm1, %v3199_v5, 0.0 }
 0xe6f   :  { %1409 = vrot.lane.b32.xlu0 %v1150_v56, %s2794_s19 }
 0xe8e   :  { %1647 = vadd.xlane.f32.xlu0 %v1646_v1 }
 0xea4   :  { %1659 = vrot.lane.b32.xlu0 %v3096_v22, %s2792_s17 }
 0xea9   :  { %v1349_v8 = vpop.xlane.xlu0 %1348 }
 0xeaa   :  { %2756 = vrcp.f32 %v1349_v8 }
 0xead   :  { %v1352_v60 = vpop.xlane.xlu0 %1351 }
 0xeae   :  { %2758 = vrcp.f32 %v1352_v60 }
 0xeb1   :  { %v1361_v6 = vpop.permute.xlu0 %1360 }
 0xeb2   :  { %2581 = vmatpush3.bf16.msra.mxu1 %v1361_v6 }
 0xeb4   :  { %v2757_v61 = vpop.eup %2756 }
 0xeb5   :  { %v1795_v10 = vpop.permute.xlu0 %1794  ;;  %v1355_v63 = vmul.f32 %v2757_v61, %v2751_v47 }
 0xeb6   :  { %2622 = vmatmul.mubr.msk.bf16.vlgmr.msra.gmra.mrb[40].mxu0 %vm138_vm2, %v1795_v10 }
 0xeb7   :  { %2642 = vmatprep.mubr.msk.bf16.mxu0 %vm2783_vm0, %v2782_v0 }
 0xeb8   :  { %v2759_v62 = vpop.eup %2758 }
 0xeb9   :  { %v1356_v4 = vmul.f32 %v2759_v62, %v2753_v49 }
 0xebb   :  { %v1357_v9 = vpack.c.bf16 %v1356_v4, %v1355_v63 }
 0xebd   :  { %2583 = vmatmul.mubr.msk.bf16.vlgmr.msra.gmra.mrb[24].mxu1 %vm85_vm1, %v1357_v9 }
 0xee6   :  { %v1639_v12 = vpop.xlane.xlu0 %1638 }
 0xee7   :  { %v1641_v13 = vsub.f32 %v1631_v55, %v1639_v12  ;;  %v1152_v55 = vunpack.c.l.bf16 %v3049_v21 }
 0xee9   :  { %v1644_v15 = vmul.f32 1.442695, %v1641_v13 }
 0xeea   :  { %v1410_v18 = vpop.permute.xlu0 %1409 }
 0xeeb   :  { %2760 = vpow2.f32 %v1644_v15  ;;  %2586 = vmatprep.subr.mxu1 %v1410_v18 }
 0xeec   :  { %2587 = vmatpush3.msra.mxu1 %v1410_v18 }
 0xeed   :  { %2591 = vmatprep.subr.mxu1 %v1495_v7 }
 0xef5   :  { %v2761_v28 = vpop.eup %2760 }
 0xef6   :  { %v1649_v2 = vsel %vm85_vm1, %v2761_v28, 0.0 }
 0xef7   :  { %1650 = vadd.xlane.f32.xlu1 %v1649_v2 }
 0xf08   :  { %1657 = vrot.lane.b32.xlu1 %v3098_v23, %s2792_s17 }
 0xf1b   :  { %v1648_v40 = vpop.xlane.xlu0 %1647 }
 0xf1f   :  { %v1660_v42 = vpop.permute.xlu0 %1659 }
 0xf84   :  { %v1651_v39 = vpop.xlane.xlu1 %1650 }
 0xf85   :  { %2762 = vrcp.f32 %v1651_v39 }
 0xf86   :  { %2764 = vrcp.f32 %v1648_v40 }
 0xf88   :  { %v1658_v26 = vpop.permute.xlu1 %1657 }
 0xf89   :  { %v1843_v32 = vpop.f32.mrb[40].mxu0 }
 0xf8a   :  { %v1844_v34 = vadd.f32 %v1843_v32, %v3120_v36  ;;  %v2623_v35 = vpop.f32.mrb[41].mxu0 }
 0xf8b   :  { %v1846_v3 = vpop.f32.mrb[42].mxu0 }
 0xf8c   :  { %v1847_v31 = vadd.f32 %v1846_v3, %v3123_v38  ;;  %v2624_v33 = vpop.f32.mrb[43].mxu0  ;;  %v1850_v37 = vsel %vm85_vm1, %v1844_v34, -inf }
 0xf8d   :  { %1851 = vmax.xlane.f32.xlu1 %v1850_v37 }
 0xf8e   :  { %v1853_v25 = vsel %vm85_vm1, %v1847_v31, -inf }
 0xf8f   :  { %1854 = vmax.xlane.f32.xlu0 %v1853_v25  ;;  %v2763_v38 = vpop.eup %2762 }
 0xf90   :  { %v1401_v24 = vpop.f32.mrb[24].mxu1  ;;  %v2765_v29 = vpop.eup %2764  ;;  %v1655_v30 = vmul.f32 %v2763_v38, %v2761_v28 }
 0xf91   :  { %v2584_v27 = vpop.f32.mrb[25].mxu1  ;;  %2588 = vmatprep.mubr.msk.f32.mxu1 %vm138_vm2, %v1401_v24  ;;  %v2698_v24 = vld [vmem:[%s3323_s3 + $0xc] ss:$16 sps:$4 sm:$0xff]  }
 0xf92   :  { %v1404_v36 = vpop.f32.mrb[26].mxu1  ;;  %2639 = vmatpush3.bf16.msra.mxu0 %v2698_v24  ;;  %v2699_v27 = vld [vmem:[%s3323_s3 + $0x2c] ss:$16 sps:$4 sm:$0xff]  }
 0xf93   :  { %v2585_v41 = vpop.f32.mrb[27].mxu1  ;;  %2589 = vmatmul.mubr.msk.f32.vlgmr.msra.gmra.mrb[10].mxu1 %vm138_vm2, %v1404_v36  ;;  %2640 = vmatprep.subr.bf16.mxu0 %v2782_v0 }
 0xf94   :  { %2593 = vmatprep.mubr.msk.f32.mxu1 %vm138_vm2, %v3166_v14  ;;  %2592 = vmatpush3.msra.mxu1 %v1495_v7  ;;  %v1654_v14 = vmul.f32 %v2765_v29, %v3199_v5 }
 0xf95   :  { %2604 = vmatprep.subr.bf16.mxu1 %v2782_v0 }
 0xf96   :  { %v1656_v43 = vpack.c.bf16 %v1655_v30, %v1654_v14  ;;  %2641 = vmatpush3.bf16.msra.mxu0 %v2699_v27 }
 0xf97   :  { %2646 = vmatprep.subr.bf16.mxu0 %v2782_v0 }
 0xf9b   :  { %2594 = vmatmul.mubr.msk.f32.vlgmr.msra.gmra.mrb[10].mxu1 %vm138_vm2, %v3168_v16 }
 0xf9c   :  { %2605 = vmatpush3.bf16.msra.mxu1 %v1658_v26  ;;  %2608 = vmatprep.mubr.msk.bf16.mxu1 %vm2783_vm0, %v2782_v0 }
 0xf9d   :  { %2606 = vmatprep.subr.bf16.mxu1 %v2782_v0 }
 0xf9e   :  { %1873 = vrot.lane.b32.xlu1 %v3098_v23, %s2793_s18 }
 0xfa0   :  { %2607 = vmatpush3.bf16.msra.mxu1 %v1660_v42 }
 0xfa3   :  { %2609 = vmatmul.mubr.msk.bf16.vlgmr.msra.gmra.mrb[28].mxu1 %vm85_vm1, %v1656_v43 }
0x101a   :  { %v1852_v44 = vpop.xlane.xlu1 %1851 }
0x101b   :  { %v1856_v16 = vsub.f32 %v1844_v34, %v1852_v44  ;;  %v3259_v34 = vld [vmem:[%s3325_s5 + $0x4] ss:$0 sm:$0xff] }
0x101c   :  { %v1855_v45 = vpop.xlane.xlu0 %1854 }
0x101d   :  { %v1858_v47 = vmul.f32 1.442695, %v1856_v16  ;;  %v1857_v48 = vsub.f32 %v1847_v31, %v1855_v45 }
0x101e   :  { %v1874_v59 = vpop.permute.xlu1 %1873 }
0x101f   :  { %2766 = vpow2.f32 %v1858_v47  ;;  %v1860_v46 = vmul.f32 1.442695, %v1857_v48 }
0x1021   :  { %2768 = vpow2.f32 %v1860_v46  ;;  %v2700_v46 = vld [vmem:[%s3328_s4] sm:$0xff]  }
0x1029   :  { %v2767_v49 = vpop.eup %2766 }
0x102a   :  { %v1862_v50 = vsel %vm85_vm1, %v2767_v49, 0.0 }
0x102b   :  { %v2769_v51 = vpop.eup %2768  ;;  %1863 = vadd.xlane.f32.xlu0 %v1862_v50  ;;  %v2701_v50 = vld [vmem:[%s3328_s4 + $0x8] sm:$0xff]  }
0x102c   :  { %v1865_v23 = vsel %vm85_vm1, %v2769_v51, 0.0 }
0x102d   :  { %1866 = vadd.xlane.f32.xlu1 %v1865_v23  ;;  %v2703_v23 = vld [vmem:[%s3328_s4 + $0x18] sm:$0xff]  }
0x103e   :  { %1875 = vrot.lane.b32.xlu1 %v3096_v22, %s2793_s18 }
0x1041   :  { %1708 = vrot.lane.b32.xlu0 %v1151_v52, %s2794_s19 }
0x1042   :  { %2010 = vrot.lane.b32.xlu1 %v3024_v19, %s2794_s19 }
0x1045   :  { %1924 = vrot.lane.b32.xlu0 %v1152_v55, %s2794_s19 }
0x1076   :  { %v1700_v17 = vpop.f32.mrb[28].mxu1 }
0x1077   :  { %v2610_v56 = vpop.f32.mrb[29].mxu1  ;;  %2614 = vmatprep.mubr.msk.f32.mxu1 %vm138_vm2, %v1700_v17 }
0x1078   :  { %v1703_v57 = vpop.f32.mrb[30].mxu1 }
0x1079   :  { %v2611_v58 = vpop.f32.mrb[31].mxu1 }
0x10b8   :  { %v1864_v20 = vpop.xlane.xlu0 %1863 }
0x10b9   :  { %2770 = vrcp.f32 %v1864_v20 }
0x10ba   :  { %v1867_v5 = vpop.xlane.xlu1 %1866 }
0x10bb   :  { %2772 = vrcp.f32 %v1867_v5 }
0x10bc   :  { %v1709_v22 = vpop.permute.xlu0 %1708 }
0x10bd   :  { %2612 = vmatprep.subr.mxu1 %v1709_v22 }
0x10be   :  { %2613 = vmatpush3.msra.mxu1 %v1709_v22  ;;  %v1876_v1 = vpop.permute.xlu1 %1875 }
0x10bf   :  { %2615 = vmatmul.mubr.msk.f32.vlgmr.msra.gmra.mrb[10].mxu1 %vm138_vm2, %v1703_v57  ;;  %2625 = vmatprep.subr.bf16.mxu1 %v2782_v0 }
0x10c0   :  { %2626 = vmatpush3.bf16.msra.mxu1 %v1874_v59  ;;  %2629 = vmatprep.mubr.msk.bf16.mxu1 %vm2783_vm0, %v2782_v0  ;;  %v1925_v19 = vpop.permute.xlu0 %1924 }
0x10c1   :  { %2627 = vmatprep.subr.bf16.mxu1 %v2782_v0 }
0x10c2   :  { %v2011_v9 = vpop.permute.xlu1 %2010 }
0x10c3   :  { %v2771_v21 = vpop.eup %2770 }
0x10c4   :  { %2628 = vmatpush3.bf16.msra.mxu1 %v1876_v1  ;;  %v1870_v60 = vmul.f32 %v2771_v21, %v2767_v49 }
0x10c5   :  { %v2773_v8 = vpop.eup %2772  ;;  %2633 = vmatprep.subr.mxu1 %v1925_v19 }
0x10c6   :  { %v1871_v6 = vmul.f32 %v2773_v8, %v2769_v51  ;;  %v2702_v51 = vld [vmem:[%s3328_s4 + $0x10] sm:$0xff]  }
0x10c8   :  { %v1872_v10 = vpack.c.bf16 %v1871_v6, %v1870_v60 }
0x10ca   :  { %2630 = vmatmul.mubr.msk.bf16.vlgmr.msra.gmra.mrb[32].mxu1 %vm85_vm1, %v1872_v10 }
0x10cb   :  { %2634 = vmatpush3.msra.mxu1 %v1925_v19 }
0x10cc   :  { %2658 = vmatprep.subr.bf16.mxu1 %v2782_v0 }
0x119d   :  { %v1916_v61 = vpop.f32.mrb[32].mxu1 }
0x119e   :  { %v2631_v62 = vpop.f32.mrb[33].mxu1  ;;  %2635 = vmatprep.mubr.msk.f32.mxu1 %vm138_vm2, %v1916_v61 }
0x119f   :  { %v1919_v63 = vpop.f32.mrb[34].mxu1 }
0x11a0   :  { %v2632_v4 = vpop.f32.mrb[35].mxu1  ;;  %2636 = vmatmul.mubr.msk.f32.vlgmr.msra.gmra.mrb[10].mxu1 %vm138_vm2, %v1919_v63 }
0x11a1   :  { %2662 = vmatprep.mubr.msk.bf16.mxu1 %vm2783_vm0, %v2782_v0 }
0x1273   :  { %v2637_v12 = vpop.f32.mrb[10].mxu1 }
0x1274   :  { %v2014_v13 = vadd.f32 %v2637_v12, %v2011_v9  ;;  %v1999_v15 = vpop.f32.mrb[11].mxu1 }
0x1275   :  { %v2013_v18 = vadd.f32 %v2011_v9, %v1999_v15 }
0x1276   :  { %v2016_v7 = vadd.f32 %v2014_v13, %v3069_v54 }
0x1277   :  { %v2015_v28 = vadd.f32 %v2013_v18, %v3067_v53 }
0x1278   :  { %v2021_v2 = vsel %vm85_vm1, %v2016_v7, 0.0 }
0x1279   :  { %2022 = vadd.xlane.f32.xlu1 %v2021_v2  ;;  %v2018_v32 = vsel %vm85_vm1, %v2015_v28, 0.0 }
0x127a   :  { %2019 = vadd.xlane.f32.xlu0 %v2018_v32 }
0x128a   :  { %2052 = vrot.lane.b32.xlu1 %v3259_v34, %s2785_s11 }
0x128e   :  { %2156 = vrot.lane.b32.xlu1 %v3259_v34, %s2789_s14 }
0x1306   :  { %v2023_v54 = vpop.xlane.xlu1 %2022 }
0x1307   :  { %v2025_v35 = vmul.f32 0.03125, %v2023_v54  ;;  %v2020_v53 = vpop.xlane.xlu0 %2019 }
0x1308   :  { %v2024_v3 = vmul.f32 0.03125, %v2020_v53  ;;  %v2705_v53 = vld [vmem:[%s3323_s3 + $0x20] ss:$16 sps:$4 sm:$0xff]  }
0x1309   :  { %v2027_v31 = vsub.f32 %v2016_v7, %v2025_v35  ;;  %v2704_v35 = vld [vmem:[%s3323_s3] ss:$16 sps:$4 sm:$0xff]  }
0x130a   :  { %v2026_v33 = vsub.f32 %v2015_v28, %v2024_v3  ;;  %v2053_v16 = vpop.permute.xlu1 %2052  ;;  %2659 = vmatpush3.bf16.msra.mxu1 %v2704_v35 }
0x130b   :  { %v2029_v25 = vmul.f32 %v2027_v31, %v2027_v31  ;;  %2660 = vmatprep.subr.bf16.mxu1 %v2782_v0 }
0x130c   :  { %v2028_v37 = vmul.f32 %v2026_v33, %v2026_v33 }
0x130d   :  { %v2033_v40 = vsel %vm85_vm1, %v2029_v25, 0.0 }
0x130e   :  { %v2030_v39 = vsel %vm85_vm1, %v2028_v37, 0.0  ;;  %v2157_v19 = vpop.permute.xlu1 %2156  ;;  %2661 = vmatpush3.bf16.msra.mxu1 %v2705_v53 }
0x130f   :  { %2031 = vadd.xlane.f32.xlu0 %v2030_v39 }
0x1313   :  { %2034 = vadd.xlane.f32.xlu0 %v2033_v40 }
0x1329   :  { %2074 = vrot.lane.b32.xlu0 %v3090_v11, %s2789_s14 }
0x139c   :  { %v2032_v36 = vpop.xlane.xlu0 %2031 }
0x139d   :  { %v2036_v41 = vmul.f32 0.03125, %v2032_v36 }
0x139f   :  { %v2038_v38 = vadd.f32 1e-05, %v2036_v41 }
0x13a0   :  { %v2035_v26 = vpop.xlane.xlu0 %2034 }
0x13a1   :  { %2774 = vrsqrt.f32 %v2038_v38  ;;  %v2037_v11 = vmul.f32 0.03125, %v2035_v26 }
0x13a3   :  { %v2039_v29 = vadd.f32 1e-05, %v2037_v11 }
0x13a4   :  { %v2075_v52 = vpop.permute.xlu0 %2074 }
0x13a5   :  { %2776 = vrsqrt.f32 %v2039_v29 }
0x13ab   :  { %v2775_v30 = vpop.eup %2774 }
0x13ac   :  { %v2042_v14 = vmul.f32 %v2775_v30, %v2026_v33  ;;  %v2373_v30 = vld [vmem:[%s3325_s5] ss:$0 sm:$0xff] }
0x13ae   :  { %v2050_v44 = vmul.f32 %v3259_v34, %v2042_v14 }
0x13af   :  { %v2777_v42 = vpop.eup %2776 }
0x13b0   :  { %v2043_v43 = vmul.f32 %v2777_v42, %v2027_v31  ;;  %v2055_v47 = vadd.f32 %v2053_v16, %v2050_v44 }
0x13b2   :  { %v2051_v45 = vmul.f32 %v3259_v34, %v2043_v43 }
0x13b4   :  { %v2056_v48 = vadd.f32 %v2053_v16, %v2051_v45 }
0x13b6   :  { %v2061_v49 = vpack.c.bf16 %v2056_v48, %v2055_v47 }
0x13b8   :  { %2643 = vmatmul.mubr.msk.bf16.vlgmr.msra.gmra.mrb[44].mxu0 %vm85_vm1, %v2061_v49 }
0x13b9   :  { %2647 = vmatpush3.bf16.msra.mxu0 %v2700_v46  ;;  %2654 = vmatprep.mubr.msk.bf16.mxu0 %vm2783_vm0, %v2782_v0  ;;  %vm2159_vm0 = vcmask 523264  }
0x13ba   :  { %2648 = vmatprep.subr.bf16.mxu0 %v2782_v0 }
0x13bd   :  { %2649 = vmatpush3.bf16.msra.mxu0 %v2701_v50 }
0x13be   :  { %2650 = vmatprep.subr.bf16.mxu0 %v2782_v0 }
0x13c1   :  { %2651 = vmatpush3.bf16.msra.mxu0 %v2702_v51 }
0x13c2   :  { %2652 = vmatprep.subr.bf16.mxu0 %v2782_v0  ;;  %v2372_v0 = vld [vmem:[%s3325_s5 + $0x5] ss:$0 sm:$0xff] }
0x13c5   :  { %2653 = vmatpush3.bf16.msra.mxu0 %v2703_v23 }
0x148b   :  { %v2114_v55 = vpop.f32.mrb[44].mxu0 }
0x148c   :  { %v2115_v17 = vadd.f32 %v2114_v55, %v2075_v52  ;;  %v2644_v56 = vpop.f32.mrb[45].mxu0 }
0x148d   :  { %v2117_v57 = vpop.f32.mrb[46].mxu0 }
0x148e   :  { %v2118_v58 = vadd.f32 %v2117_v57, %v2075_v52  ;;  %v2645_v59 = vpop.f32.mrb[47].mxu0  ;;  %v2121_v20 = vmax.f32 %v2115_v17, 0.0 }
0x1490   :  { %v2122_v5 = vmax.f32 %v2118_v58, 0.0 }
0x1492   :  { %v2131_v22 = vpack.c.bf16 %v2122_v5, %v2121_v20 }
0x1494   :  { %2655 = vmatmul.mubr.msk.bf16.vlgmr.msra.gmra.mrb[48].mxu0 %vm2159_vm0, %v2131_v22 }
0x1567   :  { %v2197_v21 = vpop.f32.mrb[48].mxu0 }
0x1568   :  { %v2198_v1 = vadd.f32 %v2197_v21, %v2157_v19  ;;  %v2656_v8 = vpop.f32.mrb[49].mxu0 }
0x1569   :  { %v2200_v60 = vpop.f32.mrb[50].mxu0 }
0x156a   :  { %v2201_v6 = vadd.f32 %v2200_v60, %v2157_v19  ;;  %v2657_v10 = vpop.f32.mrb[51].mxu0  ;;  %v2204_v61 = vadd.f32 %v2198_v1, %v2055_v47 }
0x156c   :  { %v2207_v62 = vsel %vm85_vm1, %v2204_v61, 0.0  ;;  %v2205_v63 = vadd.f32 %v2201_v6, %v2056_v48 }
0x156d   :  { %2208 = vadd.xlane.f32.xlu1 %v2207_v62 }
0x156e   :  { %v2210_v4 = vsel %vm85_vm1, %v2205_v63, 0.0 }
0x156f   :  { %2211 = vadd.xlane.f32.xlu0 %v2210_v4 }
0x15fa   :  { %v2209_v9 = vpop.xlane.xlu1 %2208 }
0x15fb   :  { %v2213_v12 = vmul.f32 0.03125, %v2209_v9 }
0x15fc   :  { %v2212_v13 = vpop.xlane.xlu0 %2211 }
0x15fd   :  { %v2215_v15 = vsub.f32 %v2204_v61, %v2213_v12  ;;  %v2214_v18 = vmul.f32 0.03125, %v2212_v13 }
0x15ff   :  { %v2216_v7 = vsub.f32 %v2205_v63, %v2214_v18  ;;  %v2217_v28 = vmul.f32 %v2215_v15, %v2215_v15 }
0x1601   :  { %v2219_v2 = vsel %vm85_vm1, %v2217_v28, 0.0  ;;  %v2218_v32 = vmul.f32 %v2216_v7, %v2216_v7 }
0x1602   :  { %2220 = vadd.xlane.f32.xlu0 %v2219_v2 }
0x1603   :  { %v2222_v54 = vsel %vm85_vm1, %v2218_v32, 0.0 }
0x1604   :  { %2223 = vadd.xlane.f32.xlu1 %v2222_v54 }
0x1618   :  { %2233 = vrot.lane.b32.xlu0 %v3259_v34, %s2794_s19 }
0x168f   :  { %v2221_v3 = vpop.xlane.xlu0 %2220 }
0x1690   :  { %v2225_v31 = vmul.f32 0.03125, %v2221_v3 }
0x1691   :  { %v2224_v33 = vpop.xlane.xlu1 %2223 }
0x1692   :  { %v2227_v37 = vadd.f32 1e-05, %v2225_v31  ;;  %v2226_v39 = vmul.f32 0.03125, %v2224_v33 }
0x1693   :  { %v2234_v40 = vpop.permute.xlu0 %2233 }
0x1694   :  { %2778 = vrsqrt.f32 %v2227_v37  ;;  %v2228_v25 = vadd.f32 1e-05, %v2226_v39 }
0x1696   :  { %2780 = vrsqrt.f32 %v2228_v25 }
0x169e   :  { %v2779_v34 = vpop.eup %2778 }
0x169f   :  { %v2231_v24 = vmul.f32 %v2779_v34, %v2215_v15 }
0x16a0   :  { %v2781_v27 = vpop.eup %2780 }
0x16a1   :  { %v2232_v36 = vmul.f32 %v2781_v27, %v2216_v7  ;;  %v2236_v41 = vmul.f32 %v2234_v40, %v2231_v24 }
0x16a3   :  { %v2237_v38 = vmul.f32 %v2234_v40, %v2232_v36  ;;  %v2244_v26 = vadd.f32 %v2372_v0, %v2236_v41 }
0x16a5   :  { %v2245_v11 = vadd.f32 %v2372_v0, %v2237_v38 }
0x16a7   :  { %v2250_v29 = vpack.c.bf16 %v2245_v11, %v2244_v26 }
0x16a9   :  { %2663 = vmatmul.mubr.msk.bf16.vlgmr.msra.gmra.mrb[36].mxu1 %vm85_vm1, %v2250_v29 }
0x177c   :  { %v2307_v14 = vpop.f32.mrb[36].mxu1 }
0x177d   :  { %v2308_v42 = vadd.f32 %v2373_v30, %v2307_v14  ;;  %v2664_v43 = vpop.f32.mrb[37].mxu1 }
0x177e   :  { %v2310_v44 = vpop.f32.mrb[38].mxu1 }
0x177f   :  { %2314 = vst [vmem:[%s3329_s6] sm:$0xff] %v2308_v42  ;;  %v2311_v16 = vadd.f32 %v2373_v30, %v2310_v44  ;;  %v2665_v45 = vpop.f32.mrb[39].mxu1 }
0x1781   :  { %2315 = vst [vmem:[%s3329_s6 + $0x8] sm:$0xff] %v2311_v16 }

</bundles_post_ra>
